<compile_context>
chip_gen: v7x
topology: tpu7x:2x2x1
jax: 0.10.0
libtpu: 0.0.40
codegen_flags: <defaults>
</compile_context>

<pallas_src>
import math

import numpy as np
import jax
import jax.numpy as jnp
from jax import lax
from jax.experimental import pallas as pl
from jax.experimental.pallas import tpu as pltpu


# ----------------------------------------------------------------------------
# Pallas kernel: whole sequence in one invocation, fori_loop over T inside.
# ----------------------------------------------------------------------------
def _packet_timelstm3_kernel(
    tim_ref,      # SMEM (T,)            per-step timestamps
    xm_ref,       # VMEM (T, F, 2)       per-step [x, mask]
    w3hh_ref,     # VMEM (F, H, 3H)      recurrent weights, 3H on lanes
    wslab_ref,    # VMEM (6, F, 3H)      [wx3, b3(+cin*c_t), wt|0, bt|0, wd, cout|0]
    ht0_ref,      # VMEM (F, H)          initial hidden state
    lo0_ref,      # VMEM (F, 1)          initial last_occured
    ct_ref,       # VMEM (1, H)          module's self.c_t (constant in forward)
    w1_ref,       # VMEM (2H, 2H)        mlp layer-1 weight (torch layout: out,in)
    mlp_ref,      # VMEM (2H+1, 1+C)     [b1 | w2^T ; 0 | b2]
    out_ref,      # VMEM (T_pad, OUTPAD) packed rows [C_curr | pred | 0]
    ht_ref,       # VMEM (F, H)          final Ht / H_curr
    lo_ref,       # VMEM (F, 1)          final last_occured
):
    T = xm_ref.shape[0]
    H = ct_ref.shape[1]
    C = mlp_ref.shape[1] - 1
    out_pad = out_ref.shape[1]

    # Zero the (padded) output slab once so unwritten tail rows are defined.
    out_ref[...] = jnp.zeros_like(out_ref)

    # ---- loop-invariant small operands, loaded from VMEM once (hoisted) -----
    wx3 = wslab_ref[0]                       # (F, 3H)
    b3 = wslab_ref[1]                        # (F, 3H)  i-gate part has cin*c_t folded in
    wt2 = wslab_ref[2][:, :2 * H]            # (F, 2H)
    bt2 = wslab_ref[3][:, :2 * H]            # (F, 2H)
    wd = wslab_ref[4]                        # (F, 3H)
    cout = wslab_ref[5][:, :H]               # (F, H)
    c_t = ct_ref[...]                        # (1, H)
    mlp = mlp_ref[...]                       # (2H+1, 1+C)
    b1 = mlp[:2 * H, 0:1]                    # (2H, 1)
    w2t = mlp[:2 * H, 1:]                    # (2H, C)
    b2 = mlp[2 * H:2 * H + 1, 1:]            # (1, C)
    pad_w = out_pad - (H + C)
    pad_z = jnp.zeros((1, pad_w), jnp.float32) if pad_w > 0 else None

    def step(t, carry):
        ht, lo = carry                       # (F, H), (F, 1)
        tim_t = tim_ref[t]                   # scalar from SMEM
        xm = xm_ref[t]                       # (F, 2)
        x = xm[:, 0:1]                       # (F, 1)
        m = xm[:, 1:2]                       # (F, 1)  0./1.
        delta = tim_t - lo                   # (F, 1)

        # fused recurrent contraction: 3H on lanes, reduce over H (sublanes)
        hsum = jnp.sum(w3hh_ref[...] * ht[:, :, None], axis=1)       # (F, 3H)
        gates = hsum + wx3 * x + b3                                  # (F, 3H)

        # xT / delT streams
        xm_t = wt2 * x + bt2                                         # (F, 2H)
        d_t = wd * delta                                             # (F, 3H)
        t12 = jax.nn.sigmoid(xm_t + jax.nn.sigmoid(d_t[:, :2 * H]))  # (F, 2H) = T1|T2
        del_to = d_t[:, 2 * H:]                                      # (F, H)

        gi = jax.nn.sigmoid(gates[:, :H])          # cin*c_t already in bias
        gc = jnp.tanh(gates[:, 2 * H:])
        t1 = t12[:, :H]
        t2 = t12[:, H:]

        c_tilde = (1.0 - gi * t1) * c_t + gi * t1 * gc
        c_agg = (1.0 - gi) * c_t + gi * t2 * gc
        go = jax.nn.sigmoid(gates[:, H:2 * H] + cout * c_tilde + del_to)
        h_active = go * jnp.tanh(c_tilde)                            # (F, H)

        # masked aggregation over active features
        n_active = jnp.sum(m, axis=0, keepdims=True)                 # (1, 1)
        any_f = (n_active > 0.0).astype(jnp.float32)
        inv_n = pl.reciprocal(jnp.maximum(n_active, 1.0), approx=False)

        h_masked = h_active * m
        ht_new = any_f * h_masked + (1.0 - any_f) * ht               # next Ht
        lo_new = tim_t * m + (1.0 - m) * lo                          # next last_occured

        c_curr = jnp.sum(c_agg * m, axis=0, keepdims=True) * inv_n   # (1, H)
        h_agg = jnp.sum(h_masked, axis=0, keepdims=True) * inv_n     # (1, H)

        # MLP prediction stream on VPU/XLU (exact f32)
        inp = jnp.concatenate([c_curr, h_agg], axis=-1)              # (1, 2H)
        hid = jnp.sum(w1_ref[...] * inp, axis=-1, keepdims=True) + b1  # (2H, 1)
        hid = jnp.maximum(hid, 0.0)
        logits = jnp.sum(w2t * hid, axis=0, keepdims=True) + b2      # (1, C)
        z = logits - jnp.max(logits, axis=-1, keepdims=True)
        e = jnp.exp(z)
        pred = e * pl.reciprocal(jnp.sum(e, axis=-1, keepdims=True), approx=False)

        pieces = [c_curr, pred]
        if pad_z is not None:
            pieces.append(pad_z)
        out_ref[pl.ds(t, 1), :] = jnp.concatenate(pieces, axis=-1)   # lane-dense row
        return ht_new, lo_new

    ht_f, lo_f = lax.fori_loop(0, T, step, (ht0_ref[...], lo0_ref[...]))
    ht_ref[...] = ht_f
    lo_ref[...] = lo_f


# ----------------------------------------------------------------------------
# Host-side parameter packing (once per sequence call, inside jit)
# ----------------------------------------------------------------------------
def _pack_params(params, H, c_t_row, boundary):
    W = params["lstm_weights"].astype(jnp.float32)                 # (F, 3H, H+1)
    w3hh = jnp.transpose(W[:, :, 1:], (0, 2, 1))                   # (F, H, 3H)
    wx3 = W[:, :, 0]                                               # (F, 3H)
    b3 = params["lstm_bias"].astype(jnp.float32)                   # (F, 3H)
    cin = params["lstm_c_inp_weights"].astype(jnp.float32)         # (F, H)
    # fold the constant cin * c_t term into the i-gate bias
    b3 = b3.at[:, :H].add(cin * c_t_row)
    wt = params["lstm_xT_weights"][:, :, 0].astype(jnp.float32)    # (F, 2H)
    bt = params["lstm_xT_bias"].astype(jnp.float32)                # (F, 2H)
    wd = params["lstm_delT_weights"][:, :, 0].astype(jnp.float32)  # (F, 3H)
    # in-forward weight constraint: clip lstm_delT_weights[:, H, :] to <= boundary
    wd = wd.at[:, H].set(jnp.minimum(wd[:, H], boundary))
    cout = params["lstm_c_out_weights"].astype(jnp.float32)        # (F, H)

    def pad3h(a):
        return jnp.pad(a, ((0, 0), (0, 3 * H - a.shape[1])))

    wslab = jnp.stack([wx3, b3, pad3h(wt), pad3h(bt), wd, pad3h(cout)], axis=0)

    w1 = params["mlp_w1"].astype(jnp.float32)                      # (2H, 2H)
    b1 = params["mlp_b1"].astype(jnp.float32)                      # (2H,)
    w2 = params["mlp_w2"].astype(jnp.float32)                      # (C, 2H)
    b2 = params["mlp_b2"].astype(jnp.float32)                      # (C,)
    C = w2.shape[0]
    mlpslab = jnp.zeros((2 * H + 1, 1 + C), jnp.float32)
    mlpslab = mlpslab.at[:2 * H, 0].set(b1)
    mlpslab = mlpslab.at[:2 * H, 1:].set(w2.T)
    mlpslab = mlpslab.at[2 * H, 1:].set(b2)
    return w3hh, wslab, w1, mlpslab


# ----------------------------------------------------------------------------
# Sequence-level entry point: one pallas_call for all T steps.
# ----------------------------------------------------------------------------
@jax.jit
def packet_timelstm3_forward_seq(tim_seq, X_seq, mask_seq, Ht0, c_t,
                                 last_occured0, params, boundary=-0.01):
    """Run a whole packet stream through one Pallas kernel invocation.

    Returns (pred_seq (T,C), c_curr_seq (T,H), Ht_final (F,H),
             last_occured_final (F,)).  Per-step H_curr is exactly the Ht state
    fed to the next step, so only the final Ht is emitted.  X_hap / Ct of the
    PyTorch signature are unused with normalization='None'.
    """
    T = X_seq.shape[0]
    F, H = Ht0.shape
    C = params["mlp_w2"].shape[0]
    out_w = H + C
    out_pad = ((out_w + 127) // 128) * 128
    t_pad = ((T + 7) // 8) * 8

    ct_row = c_t.astype(jnp.float32).reshape(H)
    w3hh, wslab, w1, mlpslab = _pack_params(params, H, ct_row, boundary)

    tim = jnp.asarray(tim_seq, jnp.float32).reshape(T)              # (T,) -> SMEM
    xm_seq = jnp.stack([X_seq.astype(jnp.float32),
                        mask_seq.astype(jnp.float32)], axis=-1)     # (T, F, 2)
    ht0 = Ht0.astype(jnp.float32)
    lo0 = last_occured0.astype(jnp.float32).reshape(F, 1)
    ct = ct_row.reshape(1, H)

    def vmem():
        return pl.BlockSpec(memory_space=pltpu.MemorySpace.VMEM)

    out_slab, ht_f, lo_f = pl.pallas_call(
        _packet_timelstm3_kernel,
        out_shape=(
            jax.ShapeDtypeStruct((t_pad, out_pad), jnp.float32),    # [C_curr|pred|0]
            jax.ShapeDtypeStruct((F, H), jnp.float32),              # final Ht
            jax.ShapeDtypeStruct((F, 1), jnp.float32),              # final last_occured
        ),
        in_specs=[pl.BlockSpec(memory_space=pltpu.MemorySpace.SMEM)]
                 + [vmem() for _ in range(8)],
        out_specs=(vmem(), vmem(), vmem()),
    )(tim, xm_seq, w3hh, wslab, ht0, lo0, ct, w1, mlpslab)

    c_curr_seq = out_slab[:T, :H]
    pred_seq = out_slab[:T, H:H + C]
    return pred_seq, c_curr_seq, ht_f, lo_f[:, 0]


def packet_timelstm3_step(tim, X, X_hap, mask, Ht, Ct, c_t, last_occured,
                          params, boundary=-0.01):
    """Single-step forward matching the module's forward(tim, X, X_hap, mask,
    Ht, Ct) return triple (pred, H_curr, C_curr).  Prefer the sequence entry
    point above — it keeps weights resident and amortizes launch overhead."""
    del X_hap, Ct  # unused for normalization='None'
    pred, c_curr, ht, _ = packet_timelstm3_forward_seq(
        jnp.asarray(tim, jnp.float32)[None], X[None], mask[None],
        Ht, c_t, last_occured, params, boundary)
    return pred[0], ht, c_curr[0]


# ----------------------------------------------------------------------------
# Pure numpy reference (mirrors the PyTorch forward per step, with state)
# ----------------------------------------------------------------------------
def _reference_forward_seq(tim_seq, X_seq, mask_seq, Ht0, c_t, lo0, params, boundary):
    sig = lambda z: 1.0 / (1.0 + np.exp(-z))
    T_steps = np.asarray(X_seq).shape[0]
    Ht = np.array(Ht0, np.float32)
    lo = np.array(lo0, np.float32)
    ct = np.asarray(c_t, np.float32)
    W = np.asarray(params["lstm_weights"], np.float32)
    b = np.asarray(params["lstm_bias"], np.float32)
    xTw = np.asarray(params["lstm_xT_weights"], np.float32)
    xTb = np.asarray(params["lstm_xT_bias"], np.float32)
    dTw = np.array(params["lstm_delT_weights"], np.float32)
    cin = np.asarray(params["lstm_c_inp_weights"], np.float32)
    cout = np.asarray(params["lstm_c_out_weights"], np.float32)
    w1 = np.asarray(params["mlp_w1"], np.float32)
    b1 = np.asarray(params["mlp_b1"], np.float32)
    w2 = np.asarray(params["mlp_w2"], np.float32)
    b2 = np.asarray(params["mlp_b2"], np.float32)
    F_, H = Ht.shape
    dTw[:, H, :] = np.minimum(dTw[:, H, :], boundary)

    preds, cs = [], []
    for t in range(T_steps):
        X = np.asarray(X_seq[t], np.float32)
        mask = np.asarray(mask_seq[t]).astype(bool)
        tim = float(tim_seq[t])
        mf = mask.astype(np.float32)
        idx = np.nonzero(mask)[0]

        delta = (tim - lo).astype(np.float32)
        lo = tim * mf + (1.0 - mf) * lo

        Xc = X[idx]
        cur_input = np.concatenate([Xc[:, None], Ht[idx]], axis=-1)
        cur_out = np.einsum("nij,nj->ni", W[idx], cur_input) + b[idx]
        xm = xTw[idx, :, 0] * Xc[:, None] + xTb[idx]
        dl = dTw[idx, :, 0] * delta[idx][:, None]

        gi_, go_, gc_ = cur_out[:, :H], cur_out[:, H:2 * H], cur_out[:, 2 * H:]
        xm1, xm2 = xm[:, :H], xm[:, H:]
        d1, d2, do = sig(dl[:, :H]), sig(dl[:, H:2 * H]), dl[:, 2 * H:]
        T1 = sig(xm1 + d1)
        T2 = sig(xm2 + d2)
        gi = sig(gi_ + cin[idx] * ct)
        gc = np.tanh(gc_)
        ctil = (1 - gi * T1) * ct + gi * T1 * gc
        cagg = (1 - gi) * ct + gi * T2 * gc
        go = sig(go_ + cout[idx] * ctil + do)

        Hc = np.zeros((F_, H), np.float32)
        Hc[idx] = go * np.tanh(ctil)
        if not mask.any():
            Hc = Ht.copy()
        Cc = cagg.mean(0)
        Hagg = Hc[idx].mean(0)
        inp = np.concatenate([Cc, Hagg])

        h = np.maximum(inp @ w1.T + b1, 0.0)
        logits = h @ w2.T + b2
        e = np.exp(logits - logits.max())
        preds.append(e / e.sum())
        cs.append(Cc)
        Ht = Hc
    return np.stack(preds), np.stack(cs), Ht, lo


# ----------------------------------------------------------------------------
if __name__ == "__main__":
    F, H, C, T = 8, 32, 4, 16          # n_features, hidden_size, n_class, steps
    boundary = -0.01

    key = jax.random.PRNGKey(0)
    ks = jax.random.split(key, 13)

    params = dict(
        lstm_weights=math.sqrt(2.0 / (H + 1))
        * jax.random.normal(ks[0], (F, 3 * H, H + 1), jnp.float32),
        lstm_bias=jnp.zeros((F, 3 * H), jnp.float32),
        lstm_xT_weights=math.sqrt(2.0)
        * jax.random.normal(ks[1], (F, 2 * H, 1), jnp.float32),
        lstm_xT_bias=jnp.zeros((F, 2 * H), jnp.float32),
        lstm_delT_weights=math.sqrt(2.0)
        * jax.random.normal(ks[2], (F, 3 * H, 1), jnp.float32),
        lstm_c_inp_weights=jax.random.normal(ks[3], (F, H), jnp.float32),
        lstm_c_out_weights=jax.random.normal(ks[4], (F, H), jnp.float32),
        mlp_w1=(1.0 / math.sqrt(2 * H))
        * jax.random.normal(ks[5], (2 * H, 2 * H), jnp.float32),
        mlp_b1=(1.0 / math.sqrt(2 * H)) * jax.random.normal(ks[6], (2 * H,), jnp.float32),
        mlp_w2=(1.0 / math.sqrt(2 * H))
        * jax.random.normal(ks[7], (C, 2 * H), jnp.float32),
        mlp_b2=(1.0 / math.sqrt(2 * H)) * jax.random.normal(ks[8], (C,), jnp.float32),
    )

    # A short packet stream (the module's fit() loop uses tim = t + 1)
    tim_seq = jnp.arange(1, T + 1, dtype=jnp.float32)
    X_seq = jax.random.normal(ks[9], (T, F), jnp.float32)
    mask_seq = jax.random.bernoulli(ks[10], 0.5, (T, F))
    mask_seq = mask_seq.at[:, 0].set(True)          # >=1 active feature per step
    Ht0 = 0.1 * jax.random.normal(ks[11], (F, H), jnp.float32)
    # Module keeps self.c_t = 0; use a small nonzero c_t here to also validate
    # the cin*c_t bias fold (the reference uses the same c_t).
    c_t = 0.1 * jax.random.normal(ks[12], (H,), jnp.float32)
    last_occured0 = jnp.zeros((F,), jnp.float32)

    pred_seq, c_seq, ht_final, lo_final = packet_timelstm3_forward_seq(
        tim_seq, X_seq, mask_seq, Ht0, c_t, last_occured0, params, boundary)
    jax.block_until_ready((pred_seq, c_seq, ht_final, lo_final))

    pred_r, c_r, ht_r, lo_r = _reference_forward_seq(
        tim_seq, X_seq, mask_seq, Ht0, c_t, last_occured0, params, boundary)

    np.testing.assert_allclose(np.asarray(pred_seq), pred_r, rtol=3e-4, atol=1e-4)
    np.testing.assert_allclose(np.asarray(c_seq), c_r, rtol=3e-4, atol=1e-4)
    np.testing.assert_allclose(np.asarray(ht_final), ht_r, rtol=3e-4, atol=1e-4)
    np.testing.assert_allclose(np.asarray(lo_final), lo_r, rtol=1e-6, atol=1e-6)

    print("KERNEL_OK")
</pallas_src>

<mosaic_0001>
module attributes {stable_mosaic.version = 11 : i64} {
  func.func @_packet_timelstm3_kernel(%arg0: memref<16xf32, #tpu.memory_space<smem>>, %arg1: memref<16x8x2xf32, #tpu.memory_space<vmem>>, %arg2: memref<8x32x96xf32, #tpu.memory_space<vmem>>, %arg3: memref<6x8x96xf32, #tpu.memory_space<vmem>>, %arg4: memref<8x32xf32, #tpu.memory_space<vmem>>, %arg5: memref<8x1xf32, #tpu.memory_space<vmem>>, %arg6: memref<1x32xf32, #tpu.memory_space<vmem>>, %arg7: memref<64x64xf32, #tpu.memory_space<vmem>>, %arg8: memref<65x5xf32, #tpu.memory_space<vmem>>, %arg9: memref<16x128xf32, #tpu.memory_space<vmem>>, %arg10: memref<8x32xf32, #tpu.memory_space<vmem>>, %arg11: memref<8x1xf32, #tpu.memory_space<vmem>>) attributes {dimension_semantics = [], scalar_prefetch = 0 : i64, scratch_operands = 0 : i64, tpu.core_type = #tpu.core_type<tc>} {
    %cst = arith.constant 0.000000e+00 : f32
    %0 = vector.broadcast %cst : f32 to vector<16x128xf32>
    %c0 = arith.constant 0 : index
    %c0_0 = arith.constant 0 : index
    %1 = vector.load %arg9[%c0, %c0_0] : memref<16x128xf32, #tpu.memory_space<vmem>>, vector<16x128xf32>
    tpu.vector_store %arg9[%c0, %c0_0], %0 {strides = array<i32>} : memref<16x128xf32, #tpu.memory_space<vmem>>, vector<16x128xf32>,
    %c0_1 = arith.constant 0 : index
    %c0_2 = arith.constant 0 : index
    %c0_3 = arith.constant 0 : index
    %2 = vector.load %arg3[%c0_1, %c0_2, %c0_3] : memref<6x8x96xf32, #tpu.memory_space<vmem>>, vector<1x8x96xf32>
    %3 = vector.shape_cast %2 : vector<1x8x96xf32> to vector<8x96xf32>
    %c1 = arith.constant 1 : index
    %c0_4 = arith.constant 0 : index
    %c0_5 = arith.constant 0 : index
    %4 = vector.load %arg3[%c1, %c0_4, %c0_5] : memref<6x8x96xf32, #tpu.memory_space<vmem>>, vector<1x8x96xf32>
    %5 = vector.shape_cast %4 : vector<1x8x96xf32> to vector<8x96xf32>
    %c2 = arith.constant 2 : index
    %c0_6 = arith.constant 0 : index
    %c0_7 = arith.constant 0 : index
    %6 = vector.load %arg3[%c2, %c0_6, %c0_7] : memref<6x8x96xf32, #tpu.memory_space<vmem>>, vector<1x8x96xf32>
    %7 = vector.shape_cast %6 : vector<1x8x96xf32> to vector<8x96xf32>
    %8 = vector.extract_strided_slice %7 {offsets = [0, 0], sizes = [8, 64], strides = [1, 1]} : vector<8x96xf32> to vector<8x64xf32>
    %c3 = arith.constant 3 : index
    %c0_8 = arith.constant 0 : index
    %c0_9 = arith.constant 0 : index
    %9 = vector.load %arg3[%c3, %c0_8, %c0_9] : memref<6x8x96xf32, #tpu.memory_space<vmem>>, vector<1x8x96xf32>
    %10 = vector.shape_cast %9 : vector<1x8x96xf32> to vector<8x96xf32>
    %11 = vector.extract_strided_slice %10 {offsets = [0, 0], sizes = [8, 64], strides = [1, 1]} : vector<8x96xf32> to vector<8x64xf32>
    %c4 = arith.constant 4 : index
    %c0_10 = arith.constant 0 : index
    %c0_11 = arith.constant 0 : index
    %12 = vector.load %arg3[%c4, %c0_10, %c0_11] : memref<6x8x96xf32, #tpu.memory_space<vmem>>, vector<1x8x96xf32>
    %13 = vector.shape_cast %12 : vector<1x8x96xf32> to vector<8x96xf32>
    %c5 = arith.constant 5 : index
    %c0_12 = arith.constant 0 : index
    %c0_13 = arith.constant 0 : index
    %14 = vector.load %arg3[%c5, %c0_12, %c0_13] : memref<6x8x96xf32, #tpu.memory_space<vmem>>, vector<1x8x96xf32>
    %15 = vector.shape_cast %14 : vector<1x8x96xf32> to vector<8x96xf32>
    %16 = vector.extract_strided_slice %15 {offsets = [0, 0], sizes = [8, 32], strides = [1, 1]} : vector<8x96xf32> to vector<8x32xf32>
    %c0_14 = arith.constant 0 : index
    %c0_15 = arith.constant 0 : index
    %17 = vector.load %arg6[%c0_14, %c0_15] : memref<1x32xf32, #tpu.memory_space<vmem>>, vector<1x32xf32>
    %c0_16 = arith.constant 0 : index
    %c0_17 = arith.constant 0 : index
    %18 = vector.load %arg8[%c0_16, %c0_17] : memref<65x5xf32, #tpu.memory_space<vmem>>, vector<65x5xf32>
    %19 = vector.extract_strided_slice %18 {offsets = [0, 0], sizes = [64, 1], strides = [1, 1]} : vector<65x5xf32> to vector<64x1xf32>
    %20 = vector.extract_strided_slice %18 {offsets = [0, 1], sizes = [64, 4], strides = [1, 1]} : vector<65x5xf32> to vector<64x4xf32>
    %21 = vector.extract_strided_slice %18 {offsets = [64, 1], sizes = [1, 4], strides = [1, 1]} : vector<65x5xf32> to vector<1x4xf32>
    %cst_18 = arith.constant 0.000000e+00 : f32
    %22 = vector.broadcast %cst_18 : f32 to vector<1x92xf32>
    %c0_19 = arith.constant 0 : index
    %c0_20 = arith.constant 0 : index
    %23 = vector.load %arg4[%c0_19, %c0_20] : memref<8x32xf32, #tpu.memory_space<vmem>>, vector<8x32xf32>
    %c0_21 = arith.constant 0 : index
    %c0_22 = arith.constant 0 : index
    %24 = vector.load %arg5[%c0_21, %c0_22] : memref<8x1xf32, #tpu.memory_space<vmem>>, vector<8x1xf32>
    %c0_i32 = arith.constant 0 : i32
    %c16_i32 = arith.constant 16 : i32
    %25 = arith.addi %c0_i32, %c16_i32 : i32
    %c1_i32 = arith.constant 1 : i32
    %26:2 = scf.for %arg12 = %c0_i32 to %25 step %c1_i32 iter_args(%arg13 = %23, %arg14 = %24) -> (vector<8x32xf32>, vector<8x1xf32>)  : i32 {
      %29 = arith.index_cast %arg12 : i32 to index
      %30 = memref.load %arg0[%29] : memref<16xf32, #tpu.memory_space<smem>>
      %31 = arith.index_cast %arg12 : i32 to index
      %c0_28 = arith.constant 0 : index
      %c0_29 = arith.constant 0 : index
      %32 = vector.load %arg1[%31, %c0_28, %c0_29] : memref<16x8x2xf32, #tpu.memory_space<vmem>>, vector<1x8x2xf32>
      %33 = vector.shape_cast %32 : vector<1x8x2xf32> to vector<8x2xf32>
      %34 = vector.extract_strided_slice %33 {offsets = [0, 0], sizes = [8, 1], strides = [1, 1]} : vector<8x2xf32> to vector<8x1xf32>
      %35 = vector.extract_strided_slice %33 {offsets = [0, 1], sizes = [8, 1], strides = [1, 1]} : vector<8x2xf32> to vector<8x1xf32>
      %36 = vector.broadcast %30 : f32 to vector<8x1xf32>
      %37 = arith.subf %36, %arg14 : vector<8x1xf32>
      %c0_30 = arith.constant 0 : index
      %c0_31 = arith.constant 0 : index
      %c0_32 = arith.constant 0 : index
      %38 = vector.load %arg2[%c0_30, %c0_31, %c0_32] : memref<8x32x96xf32, #tpu.memory_space<vmem>>, vector<8x32x96xf32>
      %39 = vector.shape_cast %arg13 : vector<8x32xf32> to vector<8x32x1xf32>
      %40 = vector.broadcast %39 : vector<8x32x1xf32> to vector<8x32x96xf32>
      %41 = arith.mulf %38, %40 : vector<8x32x96xf32>
      %cst_33 = arith.constant dense<0.000000e+00> : vector<8x96xf32>
      %42 = vector.multi_reduction <add>, %41, %cst_33 [1] : vector<8x32x96xf32> to vector<8x96xf32>
      %43 = vector.broadcast %34 : vector<8x1xf32> to vector<8x96xf32>
      %44 = arith.mulf %3, %43 : vector<8x96xf32>
      %45 = arith.addf %42, %44 : vector<8x96xf32>
      %46 = arith.addf %45, %5 : vector<8x96xf32>
      %47 = vector.broadcast %34 : vector<8x1xf32> to vector<8x64xf32>
      %48 = arith.mulf %8, %47 : vector<8x64xf32>
      %49 = arith.addf %48, %11 : vector<8x64xf32>
      %50 = vector.broadcast %37 : vector<8x1xf32> to vector<8x96xf32>
      %51 = arith.mulf %13, %50 : vector<8x96xf32>
      %52 = vector.extract_strided_slice %51 {offsets = [0, 0], sizes = [8, 64], strides = [1, 1]} : vector<8x96xf32> to vector<8x64xf32>
      %53 = arith.negf %52 : vector<8x64xf32>
      %54 = math.exp %53 : vector<8x64xf32>
      %cst_34 = arith.constant 1.000000e+00 : f32
      %55 = vector.broadcast %cst_34 : f32 to vector<8x64xf32>
      %56 = arith.addf %55, %54 : vector<8x64xf32>
      %57 = arith.divf %55, %56 : vector<8x64xf32>
      %58 = arith.addf %49, %57 : vector<8x64xf32>
      %59 = arith.negf %58 : vector<8x64xf32>
      %60 = math.exp %59 : vector<8x64xf32>
      %cst_35 = arith.constant 1.000000e+00 : f32
      %61 = vector.broadcast %cst_35 : f32 to vector<8x64xf32>
      %62 = arith.addf %61, %60 : vector<8x64xf32>
      %63 = arith.divf %61, %62 : vector<8x64xf32>
      %64 = vector.extract_strided_slice %51 {offsets = [0, 64], sizes = [8, 32], strides = [1, 1]} : vector<8x96xf32> to vector<8x32xf32>
      %65 = vector.extract_strided_slice %46 {offsets = [0, 0], sizes = [8, 32], strides = [1, 1]} : vector<8x96xf32> to vector<8x32xf32>
      %66 = arith.negf %65 : vector<8x32xf32>
      %67 = math.exp %66 : vector<8x32xf32>
      %cst_36 = arith.constant 1.000000e+00 : f32
      %68 = vector.broadcast %cst_36 : f32 to vector<8x32xf32>
      %69 = arith.addf %68, %67 : vector<8x32xf32>
      %70 = arith.divf %68, %69 : vector<8x32xf32>
      %71 = vector.extract_strided_slice %46 {offsets = [0, 64], sizes = [8, 32], strides = [1, 1]} : vector<8x96xf32> to vector<8x32xf32>
      %72 = math.tanh %71 : vector<8x32xf32>
      %73 = vector.extract_strided_slice %63 {offsets = [0, 0], sizes = [8, 32], strides = [1, 1]} : vector<8x64xf32> to vector<8x32xf32>
      %74 = vector.extract_strided_slice %63 {offsets = [0, 32], sizes = [8, 32], strides = [1, 1]} : vector<8x64xf32> to vector<8x32xf32>
      %75 = arith.mulf %70, %73 : vector<8x32xf32>
      %cst_37 = arith.constant 1.000000e+00 : f32
      %76 = vector.broadcast %cst_37 : f32 to vector<8x32xf32>
      %77 = arith.subf %76, %75 : vector<8x32xf32>
      %78 = vector.broadcast %17 : vector<1x32xf32> to vector<8x32xf32>
      %79 = arith.mulf %77, %78 : vector<8x32xf32>
      %80 = arith.mulf %70, %73 : vector<8x32xf32>
      %81 = arith.mulf %80, %72 : vector<8x32xf32>
      %82 = arith.addf %79, %81 : vector<8x32xf32>
      %cst_38 = arith.constant 1.000000e+00 : f32
      %83 = vector.broadcast %cst_38 : f32 to vector<8x32xf32>
      %84 = arith.subf %83, %70 : vector<8x32xf32>
      %85 = vector.broadcast %17 : vector<1x32xf32> to vector<8x32xf32>
      %86 = arith.mulf %84, %85 : vector<8x32xf32>
      %87 = arith.mulf %70, %74 : vector<8x32xf32>
      %88 = arith.mulf %87, %72 : vector<8x32xf32>
      %89 = arith.addf %86, %88 : vector<8x32xf32>
      %90 = vector.extract_strided_slice %46 {offsets = [0, 32], sizes = [8, 32], strides = [1, 1]} : vector<8x96xf32> to vector<8x32xf32>
      %91 = arith.mulf %16, %82 : vector<8x32xf32>
      %92 = arith.addf %90, %91 : vector<8x32xf32>
      %93 = arith.addf %92, %64 : vector<8x32xf32>
      %94 = arith.negf %93 : vector<8x32xf32>
      %95 = math.exp %94 : vector<8x32xf32>
      %cst_39 = arith.constant 1.000000e+00 : f32
      %96 = vector.broadcast %cst_39 : f32 to vector<8x32xf32>
      %97 = arith.addf %96, %95 : vector<8x32xf32>
      %98 = arith.divf %96, %97 : vector<8x32xf32>
      %99 = math.tanh %82 : vector<8x32xf32>
      %100 = arith.mulf %98, %99 : vector<8x32xf32>
      %cst_40 = arith.constant dense<0.000000e+00> : vector<1xf32>
      %101 = vector.multi_reduction <add>, %35, %cst_40 [0] : vector<8x1xf32> to vector<1xf32>
      %102 = vector.shape_cast %101 : vector<1xf32> to vector<1x1xf32>
      %cst_41 = arith.constant 0.000000e+00 : f32
      %103 = vector.broadcast %cst_41 : f32 to vector<1x1xf32>
      %104 = arith.cmpf ogt, %102, %103 : vector<1x1xf32>
      %105 = arith.extui %104 : vector<1x1xi1> to vector<1x1xi32>
      %106 = arith.sitofp %105 : vector<1x1xi32> to vector<1x1xf32>
      %cst_42 = arith.constant 1.000000e+00 : f32
      %107 = vector.broadcast %cst_42 : f32 to vector<1x1xf32>
      %108 = arith.maximumf %102, %107 : vector<1x1xf32>
      %109 = tpu.reciprocal %108 : vector<1x1xf32> -> vector<1x1xf32>
      %110 = vector.broadcast %35 : vector<8x1xf32> to vector<8x32xf32>
      %111 = arith.mulf %100, %110 : vector<8x32xf32>
      %112 = vector.broadcast %106 : vector<1x1xf32> to vector<8x32xf32>
      %113 = arith.mulf %112, %111 : vector<8x32xf32>
      %cst_43 = arith.constant 1.000000e+00 : f32
      %114 = vector.broadcast %cst_43 : f32 to vector<1x1xf32>
      %115 = arith.subf %114, %106 : vector<1x1xf32>
      %116 = vector.broadcast %115 : vector<1x1xf32> to vector<8x32xf32>
      %117 = arith.mulf %116, %arg13 : vector<8x32xf32>
      %118 = arith.addf %113, %117 : vector<8x32xf32>
      %119 = vector.broadcast %30 : f32 to vector<8x1xf32>
      %120 = arith.mulf %119, %35 : vector<8x1xf32>
      %cst_44 = arith.constant 1.000000e+00 : f32
      %121 = vector.broadcast %cst_44 : f32 to vector<8x1xf32>
      %122 = arith.subf %121, %35 : vector<8x1xf32>
      %123 = arith.mulf %122, %arg14 : vector<8x1xf32>
      %124 = arith.addf %120, %123 : vector<8x1xf32>
      %125 = vector.broadcast %35 : vector<8x1xf32> to vector<8x32xf32>
      %126 = arith.mulf %89, %125 : vector<8x32xf32>
      %cst_45 = arith.constant dense<0.000000e+00> : vector<32xf32>
      %127 = vector.multi_reduction <add>, %126, %cst_45 [0] : vector<8x32xf32> to vector<32xf32>
      %128 = vector.shape_cast %127 : vector<32xf32> to vector<1x32xf32>
      %129 = vector.broadcast %109 : vector<1x1xf32> to vector<1x32xf32>
      %130 = arith.mulf %128, %129 : vector<1x32xf32>
      %cst_46 = arith.constant dense<0.000000e+00> : vector<32xf32>
      %131 = vector.multi_reduction <add>, %111, %cst_46 [0] : vector<8x32xf32> to vector<32xf32>
      %132 = vector.shape_cast %131 : vector<32xf32> to vector<1x32xf32>
      %133 = vector.broadcast %109 : vector<1x1xf32> to vector<1x32xf32>
      %134 = arith.mulf %132, %133 : vector<1x32xf32>
      %135 = tpu.concatenate %130, %134 in 1 : vector<1x32xf32>, vector<1x32xf32> -> vector<1x64xf32>
      %c0_47 = arith.constant 0 : index
      %c0_48 = arith.constant 0 : index
      %136 = vector.load %arg7[%c0_47, %c0_48] : memref<64x64xf32, #tpu.memory_space<vmem>>, vector<64x64xf32>
      %137 = vector.broadcast %135 : vector<1x64xf32> to vector<64x64xf32>
      %138 = arith.mulf %136, %137 : vector<64x64xf32>
      %cst_49 = arith.constant dense<0.000000e+00> : vector<64xf32>
      %139 = vector.multi_reduction <add>, %138, %cst_49 [1] : vector<64x64xf32> to vector<64xf32>
      %140 = vector.shape_cast %139 : vector<64xf32> to vector<64x1xf32>
      %141 = arith.addf %140, %19 : vector<64x1xf32>
      %cst_50 = arith.constant 0.000000e+00 : f32
      %142 = vector.broadcast %cst_50 : f32 to vector<64x1xf32>
      %143 = arith.maximumf %141, %142 : vector<64x1xf32>
      %144 = vector.broadcast %143 : vector<64x1xf32> to vector<64x4xf32>
      %145 = arith.mulf %20, %144 : vector<64x4xf32>
      %cst_51 = arith.constant dense<0.000000e+00> : vector<4xf32>
      %146 = vector.multi_reduction <add>, %145, %cst_51 [0] : vector<64x4xf32> to vector<4xf32>
      %147 = vector.shape_cast %146 : vector<4xf32> to vector<1x4xf32>
      %148 = arith.addf %147, %21 : vector<1x4xf32>
      %cst_52 = arith.constant dense<0xFF800000> : vector<1xf32>
      %149 = vector.multi_reduction <maximumf>, %148, %cst_52 [1] : vector<1x4xf32> to vector<1xf32>
      %150 = vector.shape_cast %149 : vector<1xf32> to vector<1x1xf32>
      %151 = vector.broadcast %150 : vector<1x1xf32> to vector<1x4xf32>
      %152 = arith.subf %148, %151 : vector<1x4xf32>
      %153 = math.exp %152 : vector<1x4xf32>
      %cst_53 = arith.constant dense<0.000000e+00> : vector<1xf32>
      %154 = vector.multi_reduction <add>, %153, %cst_53 [1] : vector<1x4xf32> to vector<1xf32>
      %155 = vector.shape_cast %154 : vector<1xf32> to vector<1x1xf32>
      %156 = tpu.reciprocal %155 : vector<1x1xf32> -> vector<1x1xf32>
      %157 = vector.broadcast %156 : vector<1x1xf32> to vector<1x4xf32>
      %158 = arith.mulf %153, %157 : vector<1x4xf32>
      %159 = tpu.concatenate %130, %158, %22 in 1 : vector<1x32xf32>, vector<1x4xf32>, vector<1x92xf32> -> vector<1x128xf32>
      %160 = arith.index_cast %arg12 : i32 to index
      %c0_54 = arith.constant 0 : index
      %161 = vector.load %arg9[%160, %c0_54] : memref<16x128xf32, #tpu.memory_space<vmem>>, vector<1x128xf32>
      tpu.vector_store %arg9[%160, %c0_54], %159 {strides = array<i32>} : memref<16x128xf32, #tpu.memory_space<vmem>>, vector<1x128xf32>,
      scf.yield %118, %124 : vector<8x32xf32>, vector<8x1xf32>
    }
    %c16_i32_23 = arith.constant 16 : i32
    %c0_24 = arith.constant 0 : index
    %c0_25 = arith.constant 0 : index
    %27 = vector.load %arg10[%c0_24, %c0_25] : memref<8x32xf32, #tpu.memory_space<vmem>>, vector<8x32xf32>
    tpu.vector_store %arg10[%c0_24, %c0_25], %26#0 {strides = array<i32>} : memref<8x32xf32, #tpu.memory_space<vmem>>, vector<8x32xf32>,
    %c0_26 = arith.constant 0 : index
    %c0_27 = arith.constant 0 : index
    %28 = vector.load %arg11[%c0_26, %c0_27] : memref<8x1xf32, #tpu.memory_space<vmem>>, vector<8x1xf32>
    tpu.vector_store %arg11[%c0_26, %c0_27], %26#1 {strides = array<i32>} : memref<8x1xf32, #tpu.memory_space<vmem>>, vector<8x1xf32>,
    return
  }
}

</mosaic_0001>

<bundles_post_ra>
// kernel: packet_timelstm3_forward_seq.1
= control target key start
LH: loop header
LB: loop body
LE: loop exit
PB: predicated region body
PF: predicated region fallthrough
CT: control target
= control target key end

     0   :  { %17 = vsyncpa [#allocation4], 0  ;;  %s2362_s0 = inlined_call_operand.vmem [shape: f32[16], index: 0, kind: input, shape index: {}]   ;;  %s2363_s1 = inlined_call_operand.vmem [shape: f32[16,8,2], index: 1, kind: input, shape index: {}]   ;;  %s2364_s2 = inlined_call_operand.vmem [shape: f32[8,32,96], index: 2, kind: input, shape index: {}]   ;;  %s2365_s3 = inlined_call_operand.vmem [shape: f32[6,8,96], index: 3, kind: input, shape index: {}]   ;;  %s2366_s4 = inlined_call_operand.vmem [shape: f32[8,32], index: 4, kind: input, shape index: {}]   ;;  %s2367_s5 = inlined_call_operand.vmem [shape: f32[8,1], index: 5, kind: input, shape index: {}]   ;;  %s2368_s6 = inlined_call_operand.vmem [shape: f32[1,32], index: 6, kind: input, shape index: {}]   ;;  %s2369_s7 = inlined_call_operand.vmem [shape: f32[64,64], index: 7, kind: input, shape index: {}]   ;;  %s2370_s8 = inlined_call_operand.vmem [shape: f32[65,5], index: 8, kind: input, shape index: {}]   ;;  %s2371_s9 = inlined_call_operand.vmem [shape: f32[16,128], index: 9, kind: output, shape index: {0}]   ;;  %s2372_s10 = inlined_call_operand.hbm [shape: f32[8,32], index: 10, kind: output, shape index: {1}]   ;;  %s2373_s11 = inlined_call_operand.vmem [shape: f32[8,1], index: 11, kind: output, shape index: {2}]  }
   0x1   :  { %18 = vsyncpa [#allocation3], 0  ;;  %s25_s19 = sshll.u32 %s2362_s0, 4  ;;  %s26_s19 = int_to_ptr.vmem [resolvable:$true] %s25_s19 }
   0x2   :  { %s1500_s20 = scalar_lea.vmem %s26_s19, 16  ;;  %p1505_p1 = scmp.lt.s32.totalorder %s26_s19, %s26_s19 }
   0x3   :  { %p1501_p0 = scmp.ne.s32.totalorder %s26_s19, %s1500_s20  ;;  %p1506_p2 = scmp.lt.s32.totalorder %s1500_s20, %s1500_s20 }
   0x5   :  { %p1507_p3 = por %p1506_p2, %p1505_p1 }
   0x7   :  { %p1508_p4 = pnand %p1507_p3, %p1501_p0 }
   0x9   :  { %1511 = shalt.err (!%p1508_p4)
}
   0xa   :  { %s1562_s21 = smov [#allocation2]  }
   0xb   :  { %28 = dma.vmem_to_smem %s26_s19, 16, %s1562_s21, [#allocation4]  }
   0xc   :  { %1546 = dma.done.wait [#allocation4], 16  }
   0xd   :  { %1547 = vsyncadd [#allocation4], 4294967280 }
   0xe   :  { %48 = sfence }
   0xf   :  { %v1640_v0 = vld [vmem:[%s2365_s3] sm:$0xff]  ;;  %v1645_v1 = vld [vmem:[%s2365_s3 + $0x8] sm:$0xff]  ;;  %v1650_v2 = vld [vmem:[%s2365_s3 + $0x10] sm:$0xff]  ;;  %v1563_v3 = vmov 0.0   ;;  %s1733_s20 = smov 0  }
  0x10   :  { %2388 = vst [vmem:[#allocation8_spill] sm:$0xff] %v1640_v0  ;;  %2389 = vst [vmem:[#allocation9_spill] sm:$0xff] %v1645_v1  ;;  %v1661_v4 = vld [vmem:[%s2365_s3 + $0x18] sm:$0xff]  ;;  %v1666_v5 = vld [vmem:[%s2365_s3 + $0x20] sm:$0xff] }
  0x11   :  { %2390 = vst [vmem:[#allocation10_spill] sm:$0xff] %v1650_v2  ;;  %49 = vst [vmem:[%s2371_s9] sm:$0xff] %v1563_v3  ;;  %v1671_v6 = vld [vmem:[%s2365_s3 + $0x28] sm:$0xff]  ;;  %v1676_v7 = vld [vmem:[%s2368_s6] ss:$0 sm:$0xff] }
  0x12   :  { %50 = vst [vmem:[%s2371_s9 + $0x8] sm:$0xff] %v1563_v3  ;;  %2391 = vst [vmem:[#allocation11_spill] sm:$0xff] %v1661_v4  ;;  %v1681_v8 = vld [vmem:[%s2370_s8] sm:$0xff]  ;;  %v1686_v9 = vld [vmem:[%s2370_s8 + $0x8] sm:$0xff] }
  0x13   :  { %2392 = vst [vmem:[#allocation12_spill] sm:$0xff] %v1666_v5  ;;  %2393 = vst [vmem:[#allocation13_spill] sm:$0xff] %v1671_v6  ;;  %v1691_v10 = vld [vmem:[%s2370_s8 + $0x10] sm:$0xff]  ;;  %v1696_v11 = vld [vmem:[%s2370_s8 + $0x18] sm:$0xff] }
  0x14   :  { %v1701_v12 = vld [vmem:[%s2370_s8 + $0x20] sm:$0xff]  ;;  %v1706_v13 = vld [vmem:[%s2370_s8 + $0x28] sm:$0xff]  ;;  %v1711_v14 = vld [vmem:[%s2370_s8 + $0x30] sm:$0xff] }
  0x15   :  { %v1716_v15 = vld [vmem:[%s2370_s8 + $0x38] sm:$0xff]  ;;  %v1721_v16 = vld [vmem:[%s2370_s8 + $0x40] sm:$0x1] }
  0x16   :  { %v72_v17 = vld [vmem:[%s2366_s4] sm:$0xff]  }
  0x17   :  { %v73_v18 = vld [vmem:[%s2367_s5] sm:$0xff]  }
  0x18 LB: > { %v2394_v1 = vld [vmem:[#allocation9_spill] sm:$0xff]  ;;  %v120_v19 = vlaneseq  ;;  %v2378_v20 = vmov 0   ;;  %s1767_s4 = sld [smem:[#allocation2 + %s1560_s20]]  ;;  %s1323_s5 = sshll.u32 %s1560_s20, 3  ;;  %v96_v59 = vld [vmem:[%s2364_s2 + $0x40] sm:$0xff]  ;;  %v97_v60 = vld [vmem:[%s2364_s2 + $0x48] sm:$0xff]  ;;  %v1552_v18 = vphi %v73_v18, %v2411_v18   ;;  %s1560_s20 = sphi %s1733_s20, %s79_s20   ;;  %v1556_v17 = vphi %v72_v17, %v2412_v17  }
  0x19   : > { %1381 = vset.pattern.permute.xlu1 %v2378_v20  ;;  %1380 = vset.pattern.permute.xlu0 %v2378_v20  ;;  %s1774_s22 = scalar_lea.vmem %s2363_s1, %s1323_s5  ;;  %v93_v61 = vld [vmem:[%s2364_s2 + $0x28] sm:$0xff]  ;;  %v92_v63 = vld [vmem:[%s2364_s2 + $0x20] sm:$0xff]  ;;  %vm304_vm0 = vcmask 785408   ;;  %s1566_s8 = smov 64   ;;  %v2397_v2 = vld [vmem:[#allocation10_spill] sm:$0xff]  ;;  %vm707_vm1 = vcmask 1041409  }
  0x1a   : > { %v1746_v21 = vshrl.u32 %v120_v19, 7  ;;  %v1780_v40 = vld [vmem:[%s1774_s22] sm:$0xff]  ;;  %v2395_v0 = vld [vmem:[#allocation8_spill] sm:$0xff]  ;;  %s1567_s21 = smov 96   ;;  %vm710_vm2 = vcmask 1042434   ;;  %vm713_vm3 = vcmask 1043459  }
  0x1b   : > { %v2396_v5 = vld [vmem:[#allocation12_spill] sm:$0xff]  ;;  %v2398_v4 = vld [vmem:[#allocation11_spill] sm:$0xff]  ;;  %vm716_vm4 = vcmask 1044484   ;;  %vm719_vm5 = vcmask 1045509   ;;  %vm722_vm6 = vcmask 1046534   ;;  %vm725_vm7 = vcmask 1047559  }
  0x1c   : > { %v160_v22 = vsub.s32 2, %v1746_v21  ;;  %v141_v23 = vsub.s32 1, %v1746_v21  ;;  %v2377_v26 = vsub.s32 0, %v1746_v21  ;;  %v179_v28 = vsub.s32 3, %v1746_v21  ;;  %v2399_v6 = vld [vmem:[#allocation13_spill] sm:$0xff]  ;;  %s1568_s23 = smov 32  }
  0x1d   : > { %v198_v30 = vsub.s32 4, %v1746_v21  ;;  %v217_v32 = vsub.s32 5, %v1746_v21  ;;  %v236_v34 = vsub.s32 6, %v1746_v21  ;;  %v255_v36 = vsub.s32 7, %v1746_v21  ;;  %s1570_s18 = smov 127   ;;  %s1571_s19 = smov 1  }
  0x1e   : > { %v161_v24 = vrot.slane %v1556_v17, %v160_v22  ;;  %v142_v25 = vrot.slane %v1556_v17, %v141_v23  ;;  %v123_v27 = vrot.slane %v1556_v17, %v2377_v26  ;;  %v180_v29 = vrot.slane %v1556_v17, %v179_v28  ;;  %v94_v28 = vld [vmem:[%s2364_s2 + $0x30] sm:$0xff]  ;;  %s1572_s5 = smov 31  }
  0x1f   : > { %v199_v31 = vrot.slane %v1556_v17, %v198_v30  ;;  %v218_v33 = vrot.slane %v1556_v17, %v217_v32  ;;  %v237_v35 = vrot.slane %v1556_v17, %v236_v34  ;;  %v256_v37 = vrot.slane %v1556_v17, %v255_v36  ;;  %v105_v36 = vld [vmem:[%s2364_s2 + $0x88] sm:$0xff] }
  0x20   : > { %163 = vbcast.lane.b32.xlu1 %v161_v24, 256  ;;  %144 = vbcast.lane.b32.xlu0 %v142_v25, 256  ;;  %v2374_v38 = vstv %s1767_s4  ;;  %vm905_vm8 = vcmask 15368   ;;  %vm1043_vm9 = vcmask 261120   ;;  %vm1080_vm10 = vcmask 523520  }
  0x21   : > { %v87_v39 = vsub.f32 %v2374_v38, %v1552_v18  ;;  %vm1110_vm11 = vcmask 523264   ;;  %vm1199_vm12 = vcmask 39944   ;;  %vm1222_vm13 = vcmask 32776  }
  0x22   : > { %vm1233_vm15 = vcmask 24576  }
  0x24   : > { %167 = vbcast.lane.b32.xlu1 %v161_v24, 264  ;;  %148 = vbcast.lane.b32.xlu0 %v142_v25, 264 }
  0x28   : > { %129 = vbcast.lane.b32.xlu1 %v123_v27, 264  ;;  %125 = vbcast.lane.b32.xlu0 %v123_v27, 256 }
  0x2c   : > { %182 = vbcast.lane.b32.xlu1 %v180_v29, 256  ;;  %152 = vbcast.lane.b32.xlu0 %v142_v25, 272 }
  0x30   : > { %171 = vbcast.lane.b32.xlu1 %v161_v24, 272  ;;  %186 = vbcast.lane.b32.xlu0 %v180_v29, 264 }
  0x34   : > { %205 = vbcast.lane.b32.xlu1 %v199_v31, 264  ;;  %201 = vbcast.lane.b32.xlu0 %v199_v31, 256 }
  0x38   : > { %156 = vbcast.lane.b32.xlu1 %v142_v25, 280  ;;  %133 = vbcast.lane.b32.xlu0 %v123_v27, 272  ;;  %v88_v25 = vld [vmem:[%s2364_s2] sm:$0xff] }
  0x3c   : > { %220 = vbcast.lane.b32.xlu1 %v218_v33, 256  ;;  %190 = vbcast.lane.b32.xlu0 %v180_v29, 272 }
  0x40   : > { %175 = vbcast.lane.b32.xlu1 %v161_v24, 280  ;;  %224 = vbcast.lane.b32.xlu0 %v218_v33, 264  ;;  %v89_v24 = vld [vmem:[%s2364_s2 + $0x8] sm:$0xff] }
  0x44   : > { %239 = vbcast.lane.b32.xlu1 %v237_v35, 256  ;;  %209 = vbcast.lane.b32.xlu0 %v199_v31, 272 }
  0x48   : > { %137 = vbcast.lane.b32.xlu1 %v123_v27, 280  ;;  %243 = vbcast.lane.b32.xlu0 %v237_v35, 264  ;;  %v100_v27 = vld [vmem:[%s2364_s2 + $0x60] sm:$0xff] }
  0x4c   : > { %228 = vbcast.lane.b32.xlu1 %v218_v33, 272  ;;  %194 = vbcast.lane.b32.xlu0 %v180_v29, 280  ;;  %v98_v29 = vld [vmem:[%s2364_s2 + $0x50] sm:$0xff] }
  0x50   : > { %262 = vbcast.lane.b32.xlu1 %v256_v37, 264  ;;  %258 = vbcast.lane.b32.xlu0 %v256_v37, 256 }
  0x54   : > { %247 = vbcast.lane.b32.xlu1 %v237_v35, 272  ;;  %213 = vbcast.lane.b32.xlu0 %v199_v31, 280  ;;  %v101_v31 = vld [vmem:[%s2364_s2 + $0x68] sm:$0xff] }
  0x58   : > { %266 = vbcast.lane.b32.xlu1 %v256_v37, 272  ;;  %232 = vbcast.lane.b32.xlu0 %v218_v33, 280 }
  0x5c   : > { %270 = vbcast.lane.b32.xlu1 %v256_v37, 280  ;;  %251 = vbcast.lane.b32.xlu0 %v237_v35, 280  ;;  %v104_v37 = vld [vmem:[%s2364_s2 + $0x80] sm:$0xff] }
  0x60   : > { %411 = vperm.xlu0 %1380, %v1780_v40   ;;  %467 = vperm.xlu1 %1381, %v87_v39  }
  0x92   : > { %v164_v41 = vpop.permute.xlu1 %163  ;;  %v145_v42 = vpop.permute.xlu0 %144 }
  0x93   : > { %v280_v62 = vmul.f32 %v164_v41, %v96_v59  ;;  %v276_v30 = vmul.f32 %v145_v42, %v92_v63 }
  0x95   : > { %v331_v32 = vsel %vm304_vm0, %v280_v62, 0.0 }
  0x96   : > { %v168_v43 = vpop.permute.xlu1 %167  ;;  %v149_v44 = vpop.permute.xlu0 %148 }
  0x97   : > { %v281_v3 = vmul.f32 %v168_v43, %v97_v60  ;;  %v277_v19 = vmul.f32 %v149_v44, %v93_v61  ;;  %v318_v61 = vsel %vm304_vm0, %v276_v30, 0.0  ;;  %v91_v30 = vld [vmem:[%s2364_s2 + $0x18] sm:$0xff] }
  0x99   : > { %v332_v33 = vsel %vm304_vm0, %v281_v3, 0.0  ;;  %v319_v34 = vsel %vm304_vm0, %v277_v19, 0.0  ;;  %v90_v3 = vld [vmem:[%s2364_s2 + $0x10] sm:$0xff] }
  0x9a   : > { %v130_v45 = vpop.permute.xlu1 %129  ;;  %v126_v46 = vpop.permute.xlu0 %125 }
  0x9b   : > { %v273_v35 = vmul.f32 %v130_v45, %v89_v24  ;;  %v272_v42 = vmul.f32 %v126_v46, %v88_v25  ;;  %v95_v45 = vld [vmem:[%s2364_s2 + $0x38] sm:$0xff]  ;;  %v108_v46 = vld [vmem:[%s2364_s2 + $0xa0] sm:$0xff] }
  0x9d   : > { %v305_v24 = vsel %vm304_vm0, %v272_v42, 0.0 }
  0x9e   : > { %v183_v47 = vpop.permute.xlu1 %182  ;;  %v153_v48 = vpop.permute.xlu0 %152 }
  0x9f   : > { %v284_v43 = vmul.f32 %v183_v47, %v100_v27  ;;  %v278_v44 = vmul.f32 %v153_v48, %v94_v28  ;;  %v333_v47 = vadd.f32 %v332_v33, %v331_v32  ;;  %v320_v48 = vadd.f32 %v319_v34, %v318_v61  ;;  %v112_v61 = vld [vmem:[%s2364_s2 + $0xc0] sm:$0xff] }
  0xa1   : > { %v344_v25 = vsel %vm304_vm0, %v284_v43, 0.0  ;;  %v321_v27 = vsel %vm304_vm0, %v278_v44, 0.0 }
  0xa2   : > { %v172_v49 = vpop.permute.xlu1 %171  ;;  %v187_v50 = vpop.permute.xlu0 %186 }
  0xa3   : > { %v282_v59 = vmul.f32 %v172_v49, %v98_v29  ;;  %v285_v60 = vmul.f32 %v187_v50, %v101_v31  ;;  %v306_v49 = vsel %vm304_vm0, %v273_v35, 0.0  ;;  %v102_v50 = vld [vmem:[%s2364_s2 + $0x70] sm:$0xff]  ;;  %v109_v29 = vld [vmem:[%s2364_s2 + $0xa8] sm:$0xff]  ;;  %v103_v35 = vld [vmem:[%s2364_s2 + $0x78] sm:$0xff] }
  0xa4   : > { %v307_v44 = vadd.f32 %v306_v49, %v305_v24 }
  0xa5   : > { %v334_v28 = vsel %vm304_vm0, %v282_v59, 0.0  ;;  %v345_v31 = vsel %vm304_vm0, %v285_v60, 0.0 }
  0xa6   : > { %v206_v51 = vpop.permute.xlu1 %205  ;;  %v202_v52 = vpop.permute.xlu0 %201 }
  0xa7   : > { %v289_v62 = vmul.f32 %v206_v51, %v105_v36  ;;  %v288_v63 = vmul.f32 %v202_v52, %v104_v37  ;;  %v99_v51 = vld [vmem:[%s2364_s2 + $0x58] sm:$0xff] }
  0xa9   : > { %v358_v36 = vsel %vm304_vm0, %v289_v62, 0.0  ;;  %v357_v37 = vsel %vm304_vm0, %v288_v63, 0.0  ;;  %v346_v62 = vadd.f32 %v345_v31, %v344_v25  ;;  %v107_v25 = vld [vmem:[%s2364_s2 + $0x98] sm:$0xff] }
  0xaa   : > { %v157_v53 = vpop.permute.xlu1 %156  ;;  %v134_v54 = vpop.permute.xlu0 %133  ;;  %v359_v63 = vadd.f32 %v358_v36, %v357_v37 }
  0xab   : > { %v279_v32 = vmul.f32 %v157_v53, %v95_v45  ;;  %v274_v33 = vmul.f32 %v134_v54, %v90_v3  ;;  %v110_v53 = vld [vmem:[%s2364_s2 + $0xb0] sm:$0xff]  ;;  %v322_v45 = vadd.f32 %v321_v27, %v320_v48  ;;  %v335_v3 = vadd.f32 %v334_v28, %v333_v47  ;;  %v117_v47 = vld [vmem:[%s2364_s2 + $0xe8] sm:$0xff]  ;;  %v116_v48 = vld [vmem:[%s2364_s2 + $0xe0] sm:$0xff] }
  0xae   : > { %v221_v55 = vpop.permute.xlu1 %220  ;;  %v191_v56 = vpop.permute.xlu0 %190 }
  0xaf   : > { %v292_v34 = vmul.f32 %v221_v55, %v108_v46  ;;  %v286_v42 = vmul.f32 %v191_v56, %v102_v50  ;;  %v106_v56 = vld [vmem:[%s2364_s2 + $0x90] sm:$0xff]  ;;  %v308_v46 = vsel %vm304_vm0, %v274_v33, 0.0 }
  0xb0   : > { %v309_v33 = vadd.f32 %v308_v46, %v307_v44 }
  0xb1   : > { %v370_v49 = vsel %vm304_vm0, %v292_v34, 0.0  ;;  %v347_v50 = vsel %vm304_vm0, %v286_v42, 0.0 }
  0xb2   : > { %v176_v57 = vpop.permute.xlu1 %175  ;;  %v225_v58 = vpop.permute.xlu0 %224  ;;  %v348_v37 = vadd.f32 %v347_v50, %v346_v62  ;;  %v119_v50 = vld [vmem:[%s2364_s2 + $0xf8] sm:$0xff] }
  0xb3   : > { %v283_v43 = vmul.f32 %v176_v57, %v99_v51  ;;  %v293_v59 = vmul.f32 %v225_v58, %v109_v29  ;;  %v113_v57 = vld [vmem:[%s2364_s2 + $0xc8] sm:$0xff] }
  0xb5   : > { %v336_v51 = vsel %vm304_vm0, %v283_v43, 0.0  ;;  %v371_v27 = vsel %vm304_vm0, %v293_v59, 0.0 }
  0xb6   : > { %v1795_v22 = vpop.permute.xlu1 %239  ;;  %v1797_v23 = vpop.permute.xlu0 %209  ;;  %v337_v42 = vadd.f32 %v336_v51, %v335_v3  ;;  %v372_v44 = vadd.f32 %v371_v27, %v370_v49  ;;  %v115_v51 = vld [vmem:[%s2364_s2 + $0xd8] sm:$0xff] }
  0xb7   : > { %v290_v28 = vmul.f32 %v1797_v23, %v106_v56  ;;  %v118_v23 = vld [vmem:[%s2364_s2 + $0xf0] sm:$0xff] }
  0xb8   : > { %v338_v49 = vrot.slane %v337_v42, 4 }
  0xba   : > { %v138_v39 = vpop.permute.xlu1 %137  ;;  %v244_v41 = vpop.permute.xlu0 %243 }
  0xbb   : > { %v275_v60 = vmul.f32 %v138_v39, %v91_v30  ;;  %v323_v39 = vsel %vm304_vm0, %v279_v32, 0.0  ;;  %v297_v30 = vmul.f32 %v244_v41, %v113_v57  ;;  %v111_v41 = vld [vmem:[%s2364_s2 + $0xb8] sm:$0xff] }
  0xbd   : > { %v310_v29 = vsel %vm304_vm0, %v275_v60, 0.0 }
  0xbe   : > { %v229_v52 = vpop.permute.xlu1 %228  ;;  %v195_v19 = vpop.permute.xlu0 %194 }
  0xbf   : > { %v287_v58 = vmul.f32 %v195_v19, %v103_v35  ;;  %v296_v19 = vmul.f32 %v1795_v22, %v112_v61  ;;  %v294_v24 = vmul.f32 %v229_v52, %v110_v53  ;;  %v114_v22 = vld [vmem:[%s2364_s2 + $0xd0] sm:$0xff]  ;;  %v324_v52 = vadd.f32 %v323_v39, %v322_v45 }
  0xc0   : > { %v311_v61 = vadd.f32 %v310_v29, %v309_v33  ;;  %v360_v53 = vsel %vm304_vm0, %v290_v28, 0.0 }
  0xc1   : > { %v349_v34 = vsel %vm304_vm0, %v287_v58, 0.0  ;;  %v383_v59 = vsel %vm304_vm0, %v296_v19, 0.0  ;;  %v373_v60 = vsel %vm304_vm0, %v294_v24, 0.0  ;;  %v325_v46 = vrot.slane %v324_v52, 4 }
  0xc2   : > { %v263_v54 = vpop.permute.xlu1 %262  ;;  %v259_v55 = vpop.permute.xlu0 %258  ;;  %v361_v19 = vadd.f32 %v360_v53, %v359_v63  ;;  %v312_v24 = vrot.slane %v311_v61, 4 }
  0xc3   : > { %v301_v35 = vmul.f32 %v263_v54, %v117_v47  ;;  %v300_v36 = vmul.f32 %v259_v55, %v116_v48  ;;  %v384_v54 = vsel %vm304_vm0, %v297_v30, 0.0  ;;  %v350_v55 = vadd.f32 %v349_v34, %v348_v37 }
  0xc4   : > { %v374_v47 = vadd.f32 %v373_v60, %v372_v44  ;;  %v385_v28 = vadd.f32 %v384_v54, %v383_v59  ;;  %v326_v37 = vadd.f32 %v325_v46, %v324_v52  ;;  %v313_v63 = vadd.f32 %v312_v24, %v311_v61 }
  0xc5   : > { %v397_v56 = vsel %vm304_vm0, %v301_v35, 0.0  ;;  %v396_v57 = vsel %vm304_vm0, %v300_v36, 0.0  ;;  %v351_v34 = vrot.slane %v350_v55, 4 }
  0xc6   : > { %v248_v31 = vpop.permute.xlu1 %247  ;;  %v214_v32 = vpop.permute.xlu0 %213  ;;  %v398_v29 = vadd.f32 %v397_v56, %v396_v57  ;;  %v314_v57 = vrot.slane %v313_v63, 2 }
  0xc7   : > { %v291_v43 = vmul.f32 %v214_v32, %v107_v25  ;;  %v298_v45 = vmul.f32 %v248_v31, %v114_v22  ;;  %v352_v54 = vadd.f32 %v351_v34, %v350_v55 }
  0xc9   : > { %v362_v48 = vsel %vm304_vm0, %v291_v43, 0.0  ;;  %v386_v30 = vsel %vm304_vm0, %v298_v45, 0.0  ;;  %v339_v43 = vadd.f32 %v338_v49, %v337_v42  ;;  %v315_v49 = vadd.f32 %v314_v57, %v313_v63 }
  0xca   : > { %v267_v3 = vpop.permute.xlu1 %266  ;;  %v233_v62 = vpop.permute.xlu0 %232  ;;  %v363_v35 = vadd.f32 %v362_v48, %v361_v19 }
  0xcb   : > { %v302_v58 = vmul.f32 %v267_v3, %v118_v23  ;;  %v295_v39 = vmul.f32 %v233_v62, %v111_v41  ;;  %v387_v41 = vadd.f32 %v386_v30, %v385_v28  ;;  %v327_v62 = vrot.slane %v326_v37, 2 }
  0xcc   : > { %v364_v45 = vrot.slane %v363_v35, 4  ;;  %v340_v56 = vrot.slane %v339_v43, 2 }
  0xcd   : > { %v399_v25 = vsel %vm304_vm0, %v302_v58, 0.0  ;;  %v375_v27 = vsel %vm304_vm0, %v295_v39, 0.0  ;;  %v328_v46 = vadd.f32 %v327_v62, %v326_v37  ;;  %v442_v62 = vrot.slane %v2394_v1, 3 }
  0xce   : > { %v376_v31 = vadd.f32 %v375_v27, %v374_v47  ;;  %v271_v32 = vpop.permute.xlu1 %270  ;;  %v252_v33 = vpop.permute.xlu0 %251  ;;  %v400_v23 = vadd.f32 %v399_v25, %v398_v29  ;;  %v353_v47 = vrot.slane %v352_v54, 2  ;;  %v365_v52 = vadd.f32 %v364_v45, %v363_v35 }
  0xcf   : > { %v303_v36 = vmul.f32 %v271_v32, %v119_v50  ;;  %v299_v22 = vmul.f32 %v252_v33, %v115_v51  ;;  %v341_v61 = vadd.f32 %v340_v56, %v339_v43  ;;  %v329_v25 = vrot.slane %v328_v46, 1 }
  0xd0   : > { %v377_v59 = vrot.slane %v376_v31, 4  ;;  %v354_v51 = vadd.f32 %v353_v47, %v352_v54  ;;  %v366_v19 = vrot.slane %v365_v52, 2  ;;  %v316_v27 = vrot.slane %v315_v49, 1 }
  0xd1   : > { %v401_v44 = vsel %vm304_vm0, %v303_v36, 0.0  ;;  %v388_v60 = vsel %vm304_vm0, %v299_v22, 0.0  ;;  %v342_v55 = vrot.slane %v341_v61, 1  ;;  %v441_v35 = vrot.slane %v2394_v1, 2 }
  0xd2   : > { %v402_v53 = vadd.f32 %v401_v44, %v400_v23  ;;  %v389_v3 = vadd.f32 %v388_v60, %v387_v41  ;;  %v378_v58 = vadd.f32 %v377_v59, %v376_v31  ;;  %v355_v30 = vrot.slane %v354_v51, 1 }
  0xd3   : > { %v367_v32 = vadd.f32 %v366_v19, %v365_v52  ;;  %v330_v36 = vadd.f32 %v329_v25, %v328_v46  ;;  %v343_v22 = vadd.f32 %v342_v55, %v341_v61  ;;  %v317_v37 = vadd.f32 %v316_v27, %v315_v49 }
  0xd4   : > { %v403_v39 = vrot.slane %v402_v53, 4  ;;  %v390_v42 = vrot.slane %v389_v3, 4  ;;  %v379_v48 = vrot.slane %v378_v58, 2  ;;  %v440_v43 = vrot.slane %v2394_v1, 1 }
  0xd5   : > { %v356_v60 = vadd.f32 %v355_v30, %v354_v51  ;;  %v368_v59 = vrot.slane %v367_v32, 1  ;;  %vm1244_vm0 = vcmask 293888  }
  0xd6   : > { %v404_v50 = vadd.f32 %v403_v39, %v402_v53  ;;  %v391_v24 = vadd.f32 %v390_v42, %v389_v3  ;;  %v380_v28 = vadd.f32 %v379_v48, %v378_v58  ;;  %v444_v48 = vrot.slane %v2394_v1, 5 }
  0xd7   : > { %v369_v61 = vadd.f32 %v368_v59, %v367_v32 }
  0xd8   : > { %v405_v29 = vrot.slane %v404_v50, 2  ;;  %v392_v31 = vrot.slane %v391_v24, 2  ;;  %v381_v23 = vrot.slane %v380_v28, 1 }
  0xda   : > { %v406_v63 = vadd.f32 %v405_v29, %v404_v50  ;;  %v393_v53 = vadd.f32 %v392_v31, %v391_v24  ;;  %v382_v47 = vadd.f32 %v381_v23, %v380_v28  ;;  %v443_v50 = vrot.slane %v2394_v1, 4 }
  0xdb   : > { %v446_v31 = vrot.slane %v2394_v1, 7 }
  0xdc   : > { %v407_v52 = vrot.slane %v406_v63, 1  ;;  %v394_v49 = vrot.slane %v393_v53, 1 }
  0xde   : > { %v408_v28 = vadd.f32 %v407_v52, %v406_v63  ;;  %v395_v29 = vadd.f32 %v394_v49, %v393_v53 }
  0xdf   : > { %v1917_v33 = vpop.permute.xlu0 %411  ;;  %v468_v59 = vpop.permute.xlu1 %467 }
  0xe0   : > { %v414_v34 = vmul.f32 %v1917_v33, %v2395_v0 }
  0xe2   : > { %v417_v41 = vrot.slane %v414_v34, 2  ;;  %v416_v44 = vrot.slane %v414_v34, 1  ;;  %v418_v54 = vrot.slane %v414_v34, 3  ;;  %v420_v56 = vrot.slane %v414_v34, 5 }
  0xe3   : > { %v431_v58 = vadd.f32 %v414_v34, %v317_v37  ;;  %v419_v39 = vrot.slane %v414_v34, 4  ;;  %v422_v24 = vrot.slane %v414_v34, 7  ;;  %v421_v27 = vrot.slane %v414_v34, 6 }
  0xe4   : > { %v433_v45 = vadd.f32 %v417_v41, %v343_v22  ;;  %v432_v3 = vadd.f32 %v416_v44, %v330_v36  ;;  %v434_v57 = vadd.f32 %v418_v54, %v356_v60  ;;  %v436_v19 = vadd.f32 %v420_v56, %v382_v47 }
  0xe5   : > { %v1935_v25 = vadd.f32 %v2394_v1, %v431_v58  ;;  %v435_v55 = vadd.f32 %v419_v39, %v369_v61  ;;  %v438_v32 = vadd.f32 %v422_v24, %v408_v28  ;;  %v437_v36 = vadd.f32 %v421_v27, %v395_v29 }
  0xe6   : > { %v1924_v42 = vadd.f32 %v441_v35, %v433_v45  ;;  %v1926_v46 = vadd.f32 %v440_v43, %v432_v3  ;;  %v1931_v51 = vadd.f32 %v442_v62, %v434_v57  ;;  %v1938_v30 = vadd.f32 %v444_v48, %v436_v19 }
  0xe7   : > { %v1942_v35 = vadd.f32 %v443_v50, %v435_v55  ;;  %v445_v22 = vrot.slane %v2394_v1, 6  ;;  %v1946_v37 = vadd.f32 %v446_v31, %v438_v32  ;;  %v2375_v43 = vmov 1  }
  0xe8   : > { %1389 = vtanh.f32 %v1924_v42  ;;  %1382 = vset.pattern.permute.xlu1 %v2375_v43  ;;  %1383 = vset.pattern.permute.xlu0 %v2375_v43  ;;  %v470_v54 = vmul.f32 %v2396_v5, %v468_v59  ;;  %v463_v50 = vmul.f32 %v2397_v2, %v1917_v33  ;;  %v1327_v28 = vmul.f32 -1.442695, %v1926_v46 }
  0xe9   : > { %1391 = vtanh.f32 %v1926_v46  ;;  %v1949_v34 = vadd.f32 %v445_v22, %v437_v36  ;;  %v1328_v29 = vmul.f32 -1.442695, %v1924_v42  ;;  %v1329_v32 = vmul.f32 -1.442695, %v1931_v51 }
  0xea   : > { %1393 = vtanh.f32 %v1931_v51  ;;  %v772_v62 = vrot.slane %v470_v54, 3  ;;  %v770_v56 = vrot.slane %v470_v54, 1  ;;  %v773_v57 = vrot.slane %v470_v54, 4 }
  0xeb   : > { %1395 = vtanh.f32 %v1935_v25  ;;  %v771_v58 = vrot.slane %v470_v54, 2  ;;  %v774_v39 = vrot.slane %v470_v54, 5  ;;  %v776_v47 = vrot.slane %v470_v54, 7 }
  0xec   : > { %1397 = vtanh.f32 %v1938_v30  ;;  %v775_v52 = vrot.slane %v470_v54, 6  ;;  %v1324_v61 = vmul.f32 -1.442695, %v470_v54  ;;  %v464_v24 = vadd.f32 %v2398_v4, %v463_v50 }
  0xed   : > { %1399 = vtanh.f32 %v1942_v35  ;;  %v1326_v31 = vmul.f32 -1.442695, %v1935_v25  ;;  %v1331_v33 = vmul.f32 -1.442695, %v1938_v30  ;;  %v1330_v22 = vmul.f32 -1.442695, %v1942_v35 }
  0xee   : > { %1401 = vtanh.f32 %v1946_v37 }
  0xef   : > { %1403 = vtanh.f32 %v1949_v34 }
  0xf0   : > { %1405 = vpow2.f32 %v1324_v61 }
  0xf2   : > { %v1390_v23 = vpop.eup %1389 }
  0xf3   : > { %v1392_v63 = vpop.eup %1391  ;;  %598 = vrot.lane.b32.xlu0 %v1390_v23, %s1566_s8  ;;  %v1333_v23 = vmul.f32 -1.442695, %v1946_v37 }
  0xf4   : > { %596 = vrot.lane.b32.xlu1 %v1392_v63, %s1566_s8  ;;  %v1394_v41 = vpop.eup %1393  ;;  %v1332_v63 = vmul.f32 -1.442695, %v1949_v34 }
  0xf5   : > { %v1396_v44 = vpop.eup %1395 }
  0xf6   : > { %v1398_v60 = vpop.eup %1397 }
  0xf7   : > { %600 = vrot.lane.b32.xlu0 %v1394_v41, %s1566_s8  ;;  %v1400_v53 = vpop.eup %1399 }
  0xf8   : > { %594 = vrot.lane.b32.xlu1 %v1396_v44, %s1566_s8  ;;  %v1402_v45 = vpop.eup %1401 }
  0xf9   : > { %v1404_v3 = vpop.eup %1403 }
  0xfa   : > { %v1406_v49 = vpop.eup %1405 }
  0xfb   : > { %604 = vrot.lane.b32.xlu0 %v1398_v60, %s1566_s8  ;;  %v474_v48 = vadd.f32 1.0, %v1406_v49 }
  0xfc   : > { %602 = vrot.lane.b32.xlu1 %v1400_v53, %s1566_s8 }
  0xfd   : > { %1407 = vrcp.f32 %v474_v48 }
  0xff   : > { %608 = vrot.lane.b32.xlu0 %v1402_v45, %s1566_s8 }
 0x100   : > { %606 = vrot.lane.b32.xlu1 %v1404_v3, %s1566_s8 }
 0x103   : > { %783 = vrot.lane.b32.xlu0 %v772_v62, %s1567_s21 }
 0x104   : > { %779 = vrot.lane.b32.xlu1 %v770_v56, %s1567_s21 }
 0x107   : > { %785 = vrot.lane.b32.xlu0 %v773_v57, %s1567_s21  ;;  %v1408_v19 = vpop.eup %1407 }
 0x108   : > { %781 = vrot.lane.b32.xlu1 %v771_v58, %s1567_s21  ;;  %v477_v55 = vadd.f32 %v1408_v19, %v464_v24 }
 0x10a   : > { %v1325_v27 = vmul.f32 -1.442695, %v477_v55 }
 0x10b   : > { %787 = vrot.lane.b32.xlu0 %v774_v39, %s1567_s21 }
 0x10c   : > { %777 = vrot.lane.b32.xlu1 %v470_v54, %s1567_s21  ;;  %1409 = vpow2.f32 %v1325_v27 }
 0x10d   : > { %1411 = vpow2.f32 %v1327_v28 }
 0x10e   : > { %1413 = vpow2.f32 %v1328_v29 }
 0x10f   : > { %791 = vrot.lane.b32.xlu0 %v776_v47, %s1567_s21  ;;  %1415 = vpow2.f32 %v1329_v32 }
 0x110   : > { %789 = vrot.lane.b32.xlu1 %v775_v52, %s1567_s21  ;;  %1417 = vpow2.f32 %v1326_v31 }
 0x111   : > { %1419 = vpow2.f32 %v1331_v33 }
 0x112   : > { %1421 = vpow2.f32 %v1330_v22 }
 0x113   : > { %1423 = vpow2.f32 %v1333_v23 }
 0x114   : > { %919 = vperm.xlu1 %1382, %v1780_v40   ;;  %1425 = vpow2.f32 %v1332_v63 }
 0x116   : > { %v1410_v36 = vpop.eup %1409 }
 0x117   : > { %v481_v41 = vadd.f32 1.0, %v1410_v36  ;;  %v1412_v44 = vpop.eup %1411 }
 0x118   : > { %1384 = vset.pattern.permute.xlu1 %v2378_v20  ;;  %v1414_v60 = vpop.eup %1413  ;;  %v509_v54 = vadd.f32 1.0, %v1412_v44 }
 0x119   : > { %1427 = vrcp.f32 %v481_v41  ;;  %v1416_v59 = vpop.eup %1415  ;;  %v510_v45 = vadd.f32 1.0, %v1414_v60 }
 0x11a   : > { %v1418_v53 = vpop.eup %1417  ;;  %v511_v3 = vadd.f32 1.0, %v1416_v59  ;;  %1429 = vrcp.f32 %v509_v54 }
 0x11b   : > { %v508_v62 = vadd.f32 1.0, %v1418_v53  ;;  %v1420_v56 = vpop.eup %1419  ;;  %1431 = vrcp.f32 %v510_v45 }
 0x11c   : > { %v1422_v57 = vpop.eup %1421  ;;  %1433 = vrcp.f32 %v511_v3  ;;  %v513_v47 = vadd.f32 1.0, %v1420_v56 }
 0x11d   : > { %v1424_v58 = vpop.eup %1423  ;;  %1435 = vrcp.f32 %v508_v62  ;;  %v512_v61 = vadd.f32 1.0, %v1422_v57 }
 0x11e   : > { %v1426_v39 = vpop.eup %1425  ;;  %v515_v49 = vadd.f32 1.0, %v1424_v58  ;;  %1437 = vrcp.f32 %v513_v47 }
 0x11f   : > { %v514_v50 = vadd.f32 1.0, %v1426_v39  ;;  %1439 = vrcp.f32 %v512_v61 }
 0x120   : > { %1441 = vrcp.f32 %v515_v49 }
 0x121   : > { %1443 = vrcp.f32 %v514_v50 }
 0x123   : > { %v1977_v52 = vpop.eup %1427 }
 0x124   : > { %v2384_v48 = vrot.slane %v1977_v52, 1  ;;  %v2386_v19 = vrot.slane %v1977_v52, 2  ;;  %v1981_v24 = vpop.eup %1429  ;;  %v2382_v55 = vrot.slane %v1977_v52, 3  ;;  %v2381_v22 = vrot.slane %v1977_v52, 5 }
 0x125   : > { %v1984_v27 = vpop.eup %1431  ;;  %v2380_v63 = vrot.slane %v1977_v52, 4  ;;  %v2383_v59 = vrot.slane %v1977_v52, 7  ;;  %v2385_v56 = vrot.slane %v1977_v52, 6 }
 0x126   : > { %v557_v28 = vmul.f32 %v1981_v24, %v2384_v48  ;;  %v1989_v29 = vpop.eup %1433  ;;  %v558_v31 = vmul.f32 %v1984_v27, %v2386_v19 }
 0x127   : > { %v1991_v32 = vpop.eup %1435  ;;  %v559_v33 = vmul.f32 %v1989_v29, %v2382_v55 }
 0x128   : > { %v556_v36 = vmul.f32 %v1991_v32, %v1977_v52  ;;  %v565_v23 = vsub.f32 1.0, %v557_v28  ;;  %v2003_v41 = vpop.eup %1437  ;;  %v566_v60 = vsub.f32 1.0, %v558_v31 }
 0x129   : > { %v2008_v53 = vpop.eup %1439  ;;  %v567_v45 = vsub.f32 1.0, %v559_v33  ;;  %v561_v62 = vmul.f32 %v2003_v41, %v2381_v22 }
 0x12a   : > { %v564_v3 = vsub.f32 1.0, %v556_v36  ;;  %v579_v58 = vmul.f32 %v1676_v7, %v565_v23  ;;  %v560_v47 = vmul.f32 %v2008_v53, %v2380_v63  ;;  %v2022_v61 = vpop.eup %1441  ;;  %v580_v50 = vmul.f32 %v1676_v7, %v566_v60 }
 0x12b   : > { %v2024_v49 = vpop.eup %1443  ;;  %v569_v20 = vsub.f32 1.0, %v561_v62 }
 0x12c   : > { %v562_v63 = vmul.f32 %v2024_v49, %v2385_v56  ;;  %v568_v22 = vsub.f32 1.0, %v560_v47 }
 0x12d   : > { %v583_v48 = vmul.f32 %v1676_v7, %v569_v20 }
 0x12e   : > { %v570_v56 = vsub.f32 1.0, %v562_v63 }
 0x165   : > { %v2005_v44 = vpop.permute.xlu0 %598 }
 0x166   : > { %v2010_v54 = vpop.permute.xlu1 %596  ;;  %v620_v57 = vmul.f32 %v2005_v44, %v558_v31  ;;  %v563_v31 = vmul.f32 %v2022_v61, %v2383_v59 }
 0x167   : > { %v619_v39 = vmul.f32 %v2010_v54, %v557_v28  ;;  %v581_v28 = vmul.f32 %v1676_v7, %v567_v45 }
 0x168   : > { %v2041_v60 = vadd.f32 %v620_v57, %v580_v50 }
 0x169   : > { %v2027_v38 = vadd.f32 %v619_v39, %v579_v58  ;;  %v2029_v43 = vpop.permute.xlu0 %600  ;;  %v578_v58 = vmul.f32 %v1676_v7, %v564_v3  ;;  %v571_v3 = vsub.f32 1.0, %v563_v31 }
 0x16a   : > { %v621_v23 = vmul.f32 %v2029_v43, %v559_v33  ;;  %v2036_v26 = vpop.permute.xlu1 %594 }
 0x16b   : > { %v618_v39 = vmul.f32 %v2036_v26, %v556_v36  ;;  %v706_v45 = vrot.slane %v2027_v38, 7  ;;  %v709_v36 = vrot.slane %v2041_v60, 6  ;;  %v585_v1 = vmul.f32 %v1676_v7, %v571_v3 }
 0x16c   : > { %v2045_v55 = vadd.f32 %v621_v23, %v581_v28  ;;  %v582_v23 = vmul.f32 %v1676_v7, %v568_v22  ;;  %v584_v22 = vmul.f32 %v1676_v7, %v570_v56  ;;  %1445 = vtanh.f32 %v2027_v38 }
 0x16d   : > { %v2048_v33 = vadd.f32 %v618_v39, %v578_v58  ;;  %v2050_v59 = vpop.permute.xlu0 %604  ;;  %1447 = vtanh.f32 %v2041_v60  ;;  %v2404_v38 = vrot.slane %v1977_v52, 4 }
 0x16e   : > { %v623_v57 = vmul.f32 %v2050_v59, %v561_v62  ;;  %v2054_v50 = vpop.permute.xlu1 %602  ;;  %v712_v39 = vrot.slane %v2045_v55, 5  ;;  %1449 = vtanh.f32 %v2045_v55  ;;  %v2406_v55 = vrot.slane %v1977_v52, 7 }
 0x16f   : > { %v708_v28 = vsel %vm707_vm1, %v706_v45, %v2048_v33  ;;  %v622_v58 = vmul.f32 %v2054_v50, %v560_v47  ;;  %1451 = vtanh.f32 %v2048_v33 }
 0x170   : > { %v631_v19 = vadd.f32 %v623_v57, %v583_v48  ;;  %v711_v20 = vsel %vm710_vm2, %v709_v36, %v708_v28 }
 0x171   : > { %v630_v62 = vadd.f32 %v622_v58, %v582_v23  ;;  %v2063_v0 = vpop.permute.xlu0 %608  ;;  %v714_v48 = vsel %vm713_vm3, %v712_v39, %v711_v20  ;;  %v906_v20 = vsel %vm905_vm8, %v1780_v40, 0.0 }
 0x172   : > { %v625_v2 = vmul.f32 %v2063_v0, %v563_v31  ;;  %v2067_v4 = vpop.permute.xlu1 %606  ;;  %v718_v5 = vrot.slane %v631_v19, 3  ;;  %1453 = vtanh.f32 %v631_v19 }
 0x173   : > { %v715_v45 = vrot.slane %v630_v62, 4  ;;  %v624_v47 = vmul.f32 %v2067_v4, %v562_v63  ;;  %1455 = vtanh.f32 %v630_v62 }
 0x174   : > { %v633_v57 = vadd.f32 %v625_v2, %v585_v1 }
 0x175   : > { %v717_v36 = vsel %vm716_vm4, %v715_v45, %v714_v48  ;;  %v632_v28 = vadd.f32 %v624_v47, %v584_v22  ;;  %v907_v22 = vrot.slane %v906_v20, 4 }
 0x176   : > { %v724_v23 = vrot.slane %v633_v57, 1  ;;  %v720_v31 = vsel %vm719_vm5, %v718_v5, %v717_v36  ;;  %1457 = vtanh.f32 %v633_v57 }
 0x177   : > { %v721_v3 = vrot.slane %v632_v28, 2  ;;  %v908_v36 = vadd.f32 %v907_v22, %v906_v20  ;;  %1459 = vtanh.f32 %v632_v28  ;;  %v2407_v28 = vmov 0   ;;  %v780_v22 = vpop.permute.xlu1 %779 }
 0x179   : > { %v723_v58 = vsel %vm722_vm6, %v721_v3, %v720_v31  ;;  %v909_v40 = vrot.slane %v908_v36, 2  ;;  %v2401_v3 = vrot.slane %v1977_v52, 1  ;;  %v2402_v31 = vrot.slane %v1977_v52, 3 }
 0x17a   : > { %v726_v56 = vsel %vm725_vm7, %v724_v23, %v723_v58  ;;  %v2400_v23 = vrot.slane %v1977_v52, 2 }
 0x17b   : > { %v728_v63 = vmul.f32 %v2399_v6, %v726_v56  ;;  %v910_v58 = vadd.f32 %v909_v40, %v908_v36  ;;  %v2403_v56 = vrot.slane %v1977_v52, 5 }
 0x17d   : > { %737 = vrot.lane.b32.xlu1 %v728_v63, %s1568_s23  ;;  %v731_v1 = vrot.slane %v728_v63, 2  ;;  %v730_v2 = vrot.slane %v728_v63, 1  ;;  %v732_v39 = vrot.slane %v728_v63, 3  ;;  %v735_v5 = vrot.slane %v728_v63, 6 }
 0x17e   : > { %v733_v45 = vrot.slane %v728_v63, 4  ;;  %v736_v47 = vrot.slane %v728_v63, 7  ;;  %v734_v48 = vrot.slane %v728_v63, 5  ;;  %v911_v63 = vrot.slane %v910_v58, 1 }
 0x17f   : > { %741 = vrot.lane.b32.xlu0 %v731_v1, %s1568_s23  ;;  %v2405_v1 = vrot.slane %v1977_v52, 6 }
 0x181   : > { %739 = vrot.lane.b32.xlu1 %v730_v2, %s1568_s23  ;;  %v1446_v2 = vpop.eup %1445 }
 0x182   : > { %v1448_v60 = vpop.eup %1447 }
 0x183   : > { %743 = vrot.lane.b32.xlu0 %v732_v39, %s1568_s23  ;;  %v2110_v39 = vadd.f32 %v911_v63, %v910_v58  ;;  %v1450_v33 = vpop.eup %1449 }
 0x185   : > { %749 = vrot.lane.b32.xlu1 %v735_v5, %s1568_s23  ;;  %v916_v20 = vmax.f32 %v2110_v39, 1.0  ;;  %v1452_v5 = vpop.eup %1451  ;;  %vm913_vm14 = vcmp.gt.f32.partialorder %v2110_v39, 0.0 }
 0x186   : > { %v1454_v19 = vpop.eup %1453 }
 0x187   : > { %745 = vrot.lane.b32.xlu0 %v733_v45, %s1568_s23  ;;  %1461 = vrcp.f32 %v916_v20  ;;  %v1456_v62 = vpop.eup %1455 }
 0x189   : > { %751 = vrot.lane.b32.xlu1 %v736_v47, %s1568_s23  ;;  %v782_v47 = vpop.permute.xlu1 %781 }
 0x18b   : > { %747 = vrot.lane.b32.xlu0 %v734_v48, %s1568_s23  ;;  %v784_v48 = vpop.permute.xlu0 %783 }
 0x18d   : > { %654 = vrot.lane.b32.xlu1 %v2400_v23, %s1567_s21  ;;  %v778_v36 = vpop.permute.xlu1 %777 }
 0x18f   : > { %652 = vrot.lane.b32.xlu0 %v2401_v3, %s1567_s21  ;;  %v786_v23 = vpop.permute.xlu0 %785 }
 0x191   : > { %656 = vrot.lane.b32.xlu1 %v2402_v31, %s1567_s21  ;;  %v790_v40 = vpop.permute.xlu1 %789 }
 0x193   : > { %650 = vrot.lane.b32.xlu0 %v1977_v52, %s1567_s21  ;;  %v1458_v52 = vpop.eup %1457  ;;  %v788_v3 = vpop.permute.xlu0 %787 }
 0x194   : > { %v1460_v57 = vpop.eup %1459 }
 0x195   : > { %660 = vrot.lane.b32.xlu1 %v2403_v56, %s1567_s21  ;;  %v1462_v45 = vpop.eup %1461  ;;  %v2125_v31 = vpop.permute.xlu1 %919 }
 0x197   : > { %658 = vrot.lane.b32.xlu0 %v2404_v38, %s1567_s21  ;;  %v792_v58 = vpop.permute.xlu0 %791 }
 0x199   : > { %662 = vrot.lane.b32.xlu1 %v2405_v1, %s1567_s21 }
 0x19b   : > { %875 = vrot.lane.b32.xlu0 %v1446_v2, %s1568_s23 }
 0x19d   : > { %664 = vrot.lane.b32.xlu1 %v2406_v55, %s1567_s21 }
 0x19f   : > { %877 = vrot.lane.b32.xlu0 %v1448_v60, %s1568_s23 }
 0x1a1   : > { %879 = vrot.lane.b32.xlu1 %v1450_v33, %s1568_s23 }
 0x1a3   : > { %873 = vrot.lane.b32.xlu0 %v1452_v5, %s1568_s23 }
 0x1a5   : > { %883 = vrot.lane.b32.xlu1 %v1454_v19, %s1568_s23 }
 0x1a7   : > { %881 = vrot.lane.b32.xlu0 %v1456_v62, %s1568_s23 }
 0x1a9   : > { %887 = vrot.lane.b32.xlu1 %v1458_v52, %s1568_s23 }
 0x1ab   : > { %885 = vrot.lane.b32.xlu0 %v1460_v57, %s1568_s23 }
 0x1af   : > { %1053 = vperm.xlu0 %1383, %v1462_v45  }
 0x1b3   : > { %1385 = vset.pattern.permute.xlu0 %v2407_v28 }
 0x1ef   : > { %v738_v56 = vpop.permute.xlu1 %737 }
 0x1f0   : > { %v761_v63 = vadd.f32 %v738_v56, %v1935_v25 }
 0x1f1   : > { %v742_v38 = vpop.permute.xlu0 %741 }
 0x1f2   : > { %v801_v1 = vadd.f32 %v778_v36, %v761_v63  ;;  %v763_v2 = vadd.f32 %v742_v38, %v1924_v42 }
 0x1f3   : > { %v740_v55 = vpop.permute.xlu1 %739 }
 0x1f4   : > { %v803_v60 = vadd.f32 %v782_v47, %v763_v2  ;;  %v762_v20 = vadd.f32 %v740_v55, %v1926_v46  ;;  %v1335_v33 = vmul.f32 -1.442695, %v801_v1  ;;  %v636_v1 = vsub.f32 1.0, %v1984_v27 }
 0x1f5   : > { %v744_v5 = vpop.permute.xlu0 %743 }
 0x1f6   : > { %v1337_v19 = vmul.f32 -1.442695, %v803_v60  ;;  %v802_v62 = vadd.f32 %v780_v22, %v762_v20  ;;  %v764_v52 = vadd.f32 %v744_v5, %v1931_v51  ;;  %v639_v60 = vsub.f32 1.0, %v2003_v41 }
 0x1f7   : > { %v750_v57 = vpop.permute.xlu1 %749 }
 0x1f8   : > { %1463 = vpow2.f32 %v1337_v19  ;;  %v1336_v45 = vmul.f32 -1.442695, %v802_v62  ;;  %v804_v6 = vadd.f32 %v784_v48, %v764_v52  ;;  %v767_v25 = vadd.f32 %v750_v57, %v1949_v34 }
 0x1f9   : > { %1465 = vpow2.f32 %v1335_v33  ;;  %v746_v36 = vpop.permute.xlu0 %745  ;;  %v635_v48 = vsub.f32 1.0, %v1981_v24  ;;  %v644_v33 = vmul.f32 %v1676_v7, %v636_v1 }
 0x1fa   : > { %1467 = vpow2.f32 %v1336_v45  ;;  %v1338_v42 = vmul.f32 -1.442695, %v804_v6  ;;  %v807_v56 = vadd.f32 %v790_v40, %v767_v25  ;;  %v765_v47 = vadd.f32 %v746_v36, %v1942_v35 }
 0x1fb   : > { %v752_v46 = vpop.permute.xlu1 %751  ;;  %v637_v6 = vsub.f32 1.0, %v1989_v29  ;;  %v634_v35 = vsub.f32 1.0, %v1991_v32  ;;  %v643_v5 = vmul.f32 %v1676_v7, %v635_v48 }
 0x1fc   : > { %1469 = vpow2.f32 %v1338_v42  ;;  %v805_v63 = vadd.f32 %v786_v23, %v765_v47  ;;  %v768_v22 = vadd.f32 %v752_v46, %v1946_v37  ;;  %v1341_v38 = vmul.f32 -1.442695, %v807_v56 }
 0x1fd   : > { %v748_v51 = vpop.permute.xlu0 %747  ;;  %v645_v57 = vmul.f32 %v1676_v7, %v637_v6  ;;  %v642_v36 = vmul.f32 %v1676_v7, %v634_v35  ;;  %v647_v42 = vmul.f32 %v1676_v7, %v639_v60 }
 0x1fe   : > { %v1339_v2 = vmul.f32 -1.442695, %v805_v63  ;;  %v808_v34 = vadd.f32 %v792_v58, %v768_v22  ;;  %v766_v55 = vadd.f32 %v748_v51, %v1938_v30  ;;  %v638_v30 = vsub.f32 1.0, %v2008_v53 }
 0x1ff   : > { %v655_v40 = vpop.permute.xlu1 %654  ;;  %v641_v63 = vsub.f32 1.0, %v2022_v61  ;;  %v640_v51 = vsub.f32 1.0, %v2024_v49 }
 0x200   : > { %1471 = vpow2.f32 %v1339_v2  ;;  %v1342_v23 = vmul.f32 -1.442695, %v808_v34  ;;  %v806_v37 = vadd.f32 %v788_v3, %v766_v55  ;;  %v676_v20 = vmul.f32 %v1984_v27, %v655_v40 }
 0x201   : > { %1473 = vpow2.f32 %v1341_v38  ;;  %v653_v58 = vpop.permute.xlu0 %652  ;;  %v646_v38 = vmul.f32 %v1676_v7, %v638_v30 }
 0x202   : > { %v1464_v19 = vpop.eup %1463  ;;  %1475 = vpow2.f32 %v1342_v23  ;;  %v1340_v62 = vmul.f32 -1.442695, %v806_v37  ;;  %v675_v52 = vmul.f32 %v1981_v24, %v653_v58  ;;  %v684_v3 = vmul.f32 %v676_v20, %v2005_v44 }
 0x203   : > { %v1466_v45 = vpop.eup %1465  ;;  %v835_v25 = vadd.f32 1.0, %v1464_v19  ;;  %v657_v27 = vpop.permute.xlu1 %656  ;;  %v921_v44 = vrot.slane %v2125_v31, 1  ;;  %v648_v20 = vmul.f32 %v1676_v7, %v640_v51 }
 0x204   : > { %v1468_v56 = vpop.eup %1467  ;;  %1477 = vpow2.f32 %v1340_v62  ;;  %v683_v47 = vmul.f32 %v675_v52, %v2010_v54  ;;  %v677_v46 = vmul.f32 %v1989_v29, %v657_v27  ;;  %v833_v54 = vadd.f32 1.0, %v1466_v45 }
 0x205   : > { %v834_v24 = vadd.f32 1.0, %v1468_v56  ;;  %v651_v22 = vpop.permute.xlu0 %650  ;;  %1479 = vrcp.f32 %v835_v25  ;;  %v692_v55 = vadd.f32 %v684_v3, %v644_v33 }
 0x206   : > { %v1470_v1 = vpop.eup %1469  ;;  %v691_v48 = vadd.f32 %v683_v47, %v643_v5  ;;  %v685_v2 = vmul.f32 %v677_v46, %v2029_v43  ;;  %v674_v34 = vmul.f32 %v1991_v32, %v651_v22  ;;  %v649_v43 = vmul.f32 %v1676_v7, %v641_v63 }
 0x207   : > { %1481 = vrcp.f32 %v834_v24  ;;  %v836_v29 = vadd.f32 1.0, %v1470_v1  ;;  %v661_v6 = vpop.permute.xlu1 %660  ;;  %v922_v32 = vrot.slane %v2125_v31, 2  ;;  %v925_v47 = vrot.slane %v2125_v31, 5 }
 0x208   : > { %v693_v40 = vadd.f32 %v685_v2, %v645_v57  ;;  %v682_v35 = vmul.f32 %v674_v34, %v2036_v26  ;;  %v679_v60 = vmul.f32 %v2003_v41, %v661_v6  ;;  %v1013_v23 = vmul.f32 %v921_v44, %v691_v48 }
 0x209   : > { %1483 = vrcp.f32 %v836_v29  ;;  %v659_v37 = vpop.permute.xlu0 %658  ;;  %v923_v26 = vrot.slane %v2125_v31, 3  ;;  %v1014_v57 = vmul.f32 %v922_v32, %v692_v55  ;;  %v924_v46 = vrot.slane %v2125_v31, 4 }
 0x20a   : > { %v1472_v5 = vpop.eup %1471  ;;  %v690_v58 = vadd.f32 %v682_v35, %v642_v36  ;;  %v687_v33 = vmul.f32 %v679_v60, %v2050_v59  ;;  %v678_v30 = vmul.f32 %v2008_v53, %v659_v37  ;;  %1485 = vrcp.f32 %v833_v54 }
 0x20b   : > { %v1474_v41 = vpop.eup %1473  ;;  %v837_v19 = vadd.f32 1.0, %v1472_v5  ;;  %v663_v62 = vpop.permute.xlu1 %662  ;;  %v1028_v52 = vrot.slane %v1013_v23, 7  ;;  %v1015_v59 = vmul.f32 %v923_v26, %v693_v40  ;;  %v1030_v2 = vrot.slane %v1014_v57, 6 }
 0x20c   : > { %v1476_v45 = vpop.eup %1475  ;;  %v1012_v25 = vmul.f32 %v2125_v31, %v690_v58  ;;  %v686_v3 = vmul.f32 %v678_v30, %v2054_v50  ;;  %v680_v27 = vmul.f32 %v2024_v49, %v663_v62  ;;  %v695_v53 = vadd.f32 %v687_v33, %v647_v42 }
 0x20d   : > { %v840_v36 = vadd.f32 1.0, %v1476_v45  ;;  %v876_v56 = vpop.permute.xlu0 %875  ;;  %v926_v50 = vrot.slane %v2125_v31, 6  ;;  %v839_v1 = vadd.f32 1.0, %v1474_v41  ;;  %1487 = vrcp.f32 %v837_v19 }
 0x20e   : > { %v1478_v63 = vpop.eup %1477  ;;  %v694_v24 = vadd.f32 %v686_v3, %v646_v38  ;;  %v688_v22 = vmul.f32 %v680_v27, %v2067_v4  ;;  %v1029_v51 = vsel %vm707_vm1, %v1028_v52, %v1012_v25  ;;  %v1032_v29 = vrot.slane %v1015_v59, 5 }
 0x20f   : > { %v838_v49 = vadd.f32 1.0, %v1478_v63  ;;  %v665_v48 = vpop.permute.xlu1 %664  ;;  %v1480_v34 = vpop.eup %1479  ;;  %1489 = vrcp.f32 %v840_v36  ;;  %v1031_v4 = vsel %vm710_vm2, %v1030_v2, %v1029_v51  ;;  %v1017_v6 = vmul.f32 %v925_v47, %v695_v53 }
 0x210   : > { %v696_v42 = vadd.f32 %v688_v22, %v648_v20  ;;  %v681_v54 = vmul.f32 %v2022_v61, %v665_v48  ;;  %v1016_v40 = vmul.f32 %v924_v46, %v694_v24  ;;  %v1033_v30 = vsel %vm713_vm3, %v1032_v29, %v1031_v4 }
 0x211   : > { %v1482_v55 = vpop.eup %1481  ;;  %1491 = vrcp.f32 %v838_v49  ;;  %v878_v38 = vpop.permute.xlu0 %877  ;;  %v1036_v52 = vrot.slane %v1017_v6, 3  ;;  %v927_v57 = vrot.slane %v2125_v31, 7 }
 0x212   : > { %v898_v35 = vmul.f32 %v1482_v55, %v876_v56  ;;  %v689_v60 = vmul.f32 %v681_v54, %v2063_v0  ;;  %v899_v23 = vmul.f32 %v1480_v34, %v878_v38  ;;  %v1018_v37 = vmul.f32 %v926_v50, %v696_v42 }
 0x213   : > { %v1484_v20 = vpop.eup %1483  ;;  %1493 = vrcp.f32 %v839_v1  ;;  %v880_v61 = vpop.permute.xlu1 %879  ;;  %v1034_v5 = vrot.slane %v1016_v40, 4 }
 0x214   : > { %v2186_v58 = vmul.f32 %v921_v44, %v898_v35  ;;  %v697_v33 = vadd.f32 %v689_v60, %v649_v43  ;;  %v1486_v41 = vpop.eup %1485  ;;  %v900_v19 = vmul.f32 %v1484_v20, %v880_v61  ;;  %v2191_v45 = vmul.f32 %v922_v32, %v899_v23 }
 0x215   : > { %v874_v62 = vpop.permute.xlu0 %873  ;;  %v1035_v0 = vsel %vm716_vm4, %v1034_v5, %v1033_v30  ;;  %v1038_v3 = vrot.slane %v1018_v37, 2 }
 0x216   : > { %v897_v25 = vmul.f32 %v1486_v41, %v874_v62  ;;  %v1019_v59 = vmul.f32 %v927_v57, %v697_v33  ;;  %v1037_v44 = vsel %vm719_vm5, %v1036_v52, %v1035_v0  ;;  %v1065_v43 = vrot.slane %v2186_v58, 7 }
 0x217   : > { %v884_v27 = vpop.permute.xlu1 %883  ;;  %v1488_v53 = vpop.eup %1487  ;;  %v2200_v56 = vmul.f32 %v923_v26, %v900_v19  ;;  %v1067_v22 = vrot.slane %v2191_v45, 6  ;;  %v1039_v49 = vsel %vm722_vm6, %v1038_v3, %v1037_v44 }
 0x218   : > { %v2196_v36 = vmul.f32 %v2125_v31, %v897_v25  ;;  %v1040_v24 = vrot.slane %v1019_v59, 1 }
 0x219   : > { %v882_v63 = vpop.permute.xlu0 %881  ;;  %v1490_v32 = vpop.eup %1489  ;;  %v1069_v38 = vrot.slane %v2200_v56, 5 }
 0x21a   : > { %v1066_v51 = vsel %vm707_vm1, %v1065_v43, %v2196_v36  ;;  %v901_v1 = vmul.f32 %v1488_v53, %v882_v63  ;;  %v1041_v34 = vsel %vm725_vm7, %v1040_v24, %v1039_v49 }
 0x21b   : > { %v1492_v48 = vpop.eup %1491  ;;  %v888_v2 = vpop.permute.xlu1 %887  ;;  %v1068_v42 = vsel %vm710_vm2, %v1067_v22, %v1066_v51  ;;  %v1044_v6 = vsel %vm1043_vm9, %v1041_v34, 0.0  ;;  %v1091_v22 = vld [vmem:[%s2369_s7 + $0x8] sm:$0xff]  ;;  %v1090_v51 = vld [vmem:[%s2369_s7] sm:$0xff] }
 0x21c   : > { %v902_v26 = vmul.f32 %v1492_v48, %v884_v27  ;;  %v2208_v54 = vmul.f32 %v924_v46, %v901_v1  ;;  %v904_v29 = vmul.f32 %v1490_v32, %v888_v2  ;;  %v1070_v23 = vsel %vm713_vm3, %v1069_v38, %v1068_v42  ;;  %v1093_v48 = vld [vmem:[%s2369_s7 + $0x18] sm:$0xff]  ;;  %v1092_v2 = vld [vmem:[%s2369_s7 + $0x10] sm:$0xff] }
 0x21d   : > { %v1494_v55 = vpop.eup %1493  ;;  %v886_v4 = vpop.permute.xlu0 %885  ;;  %v1045_v46 = vrot.slane %v1044_v6, 4  ;;  %v2408_v1 = vsub.s32 0, %v1746_v21  ;;  %v1095_v21 = vld [vmem:[%s2369_s7 + $0x28] sm:$0xff] }
 0x21e   : > { %v2214_v40 = vmul.f32 %v925_v47, %v902_v26  ;;  %v1071_v35 = vrot.slane %v2208_v54, 4  ;;  %v903_v60 = vmul.f32 %v1494_v55, %v886_v4  ;;  %v2218_v37 = vmul.f32 %v927_v57, %v904_v29  ;;  %v1094_v4 = vld [vmem:[%s2369_s7 + $0x20] sm:$0xff] }
 0x21f   : > { %v1046_v33 = vadd.f32 %v1045_v46, %v1044_v6  ;;  %v1097_v46 = vld [vmem:[%s2369_s7 + $0x38] sm:$0xff] }
 0x220   : > { %v1073_v20 = vrot.slane %v2214_v40, 3  ;;  %v1072_v61 = vsel %vm716_vm4, %v1071_v35, %v1070_v23  ;;  %v2224_v5 = vmul.f32 %v926_v50, %v903_v60  ;;  %v1077_v41 = vrot.slane %v2218_v37, 1 }
 0x221   : > { %v1047_v62 = vrot.slane %v1046_v33, 2 }
 0x222   : > { %v1074_v47 = vsel %vm719_vm5, %v1073_v20, %v1072_v61  ;;  %v1075_v30 = vrot.slane %v2224_v5, 2  ;;  %v1096_v20 = vld [vmem:[%s2369_s7 + $0x30] sm:$0xff] }
 0x223   : > { %v1048_v25 = vadd.f32 %v1047_v62, %v1046_v33 }
 0x224   : > { %v1076_v19 = vsel %vm722_vm6, %v1075_v30, %v1074_v47 }
 0x225   : > { %v1078_v52 = vsel %vm725_vm7, %v1077_v41, %v1076_v19  ;;  %v1049_v50 = vrot.slane %v1048_v25, 1 }
 0x226   : > { %v1081_v0 = vsel %vm1080_vm10, %v1078_v52, 0.0 }
 0x227   : > { %v1082_v57 = vrot.slane %v1081_v0, 4  ;;  %v1050_v43 = vadd.f32 %v1049_v50, %v1048_v25 }
 0x229   : > { %v1083_v3 = vadd.f32 %v1082_v57, %v1081_v0 }
 0x22b   : > { %v1084_v31 = vrot.slane %v1083_v3, 2 }
 0x22d   : > { %v1085_v27 = vadd.f32 %v1084_v31, %v1083_v3 }
 0x22e   : > { %v1054_v44 = vpop.permute.xlu0 %1053 }
 0x22f   : > { %v1086_v59 = vrot.slane %v1085_v27, 1  ;;  %v2231_v63 = vmul.f32 %v1054_v44, %v1050_v43 }
 0x231   : > { %v1087_v53 = vadd.f32 %v1086_v59, %v1085_v27 }
 0x233   : > { %v1088_v24 = vmul.f32 %v1087_v53, %v1054_v44  ;;  %v2409_v53 = vmov 1  }
 0x235   : > { %v1089_v32 = vsel %vm1043_vm9, %v2231_v63, %v1088_v24 }
 0x236   : > { %v1101_v49 = vrot.slane %v1089_v32, %v2408_v1 }
 0x238   : > { %v1103_v34 = vmul.f32 %v1101_v49, %v1091_v22  ;;  %v1102_v42 = vmul.f32 %v1101_v49, %v1090_v51  ;;  %v1105_v55 = vmul.f32 %v1101_v49, %v1093_v48  ;;  %v1104_v38 = vmul.f32 %v1101_v49, %v1092_v2 }
 0x239   : > { %v1107_v60 = vmul.f32 %v1101_v49, %v1095_v21  ;;  %v1106_v23 = vmul.f32 %v1101_v49, %v1094_v4  ;;  %v1109_v47 = vmul.f32 %v1101_v49, %v1097_v46  ;;  %v1108_v30 = vmul.f32 %v1101_v49, %v1096_v20 }
 0x23a   : > { %v1114_v26 = vsel %vm1110_vm11, %v1103_v34, 0.0  ;;  %v1111_v29 = vsel %vm1110_vm11, %v1102_v42, 0.0  ;;  %v1120_v6 = vsel %vm1110_vm11, %v1105_v55, 0.0  ;;  %v1117_v35 = vsel %vm1110_vm11, %v1104_v38, 0.0 }
 0x23b   : > { %1115 = vadd.xlane.f32.xlu0 %v1114_v26  ;;  %1112 = vadd.xlane.f32.xlu1 %v1111_v29  ;;  %v1126_v61 = vsel %vm1110_vm11, %v1107_v60, 0.0  ;;  %v1123_v33 = vsel %vm1110_vm11, %v1106_v23, 0.0  ;;  %v1132_v41 = vsel %vm1110_vm11, %v1109_v47, 0.0  ;;  %v1129_v19 = vsel %vm1110_vm11, %v1108_v30, 0.0 }
 0x23f   : > { %1121 = vadd.xlane.f32.xlu0 %v1120_v6  ;;  %1118 = vadd.xlane.f32.xlu1 %v1117_v35 }
 0x243   : > { %1127 = vadd.xlane.f32.xlu0 %v1126_v61  ;;  %1124 = vadd.xlane.f32.xlu1 %v1123_v33 }
 0x247   : > { %1133 = vadd.xlane.f32.xlu0 %v1132_v41  ;;  %1130 = vadd.xlane.f32.xlu1 %v1129_v19 }
 0x2c8   : > { %v1116_v62 = vpop.xlane.xlu0 %1115  ;;  %v1113_v52 = vpop.xlane.xlu1 %1112 }
 0x2c9   : > { %v1136_v0 = vadd.f32 %v1116_v62, %v1686_v9  ;;  %v1135_v57 = vadd.f32 %v1113_v52, %v1681_v8 }
 0x2cb   : > { %v1144_v25 = vmax.f32 %v1136_v0, 0.0  ;;  %v1143_v3 = vmax.f32 %v1135_v57, 0.0 }
 0x2cc   : > { %v1122_v31 = vpop.xlane.xlu0 %1121  ;;  %v1119_v50 = vpop.xlane.xlu1 %1118 }
 0x2cd   : > { %v1137_v27 = vadd.f32 %v1119_v50, %v1691_v10  ;;  %1158 = vperm.xlu0 %1385, %v1144_v25   ;;  %1153 = vperm.xlu1 %1384, %v1143_v3   ;;  %v1138_v59 = vadd.f32 %v1122_v31, %v1696_v11 }
 0x2cf   : > { %v1145_v44 = vmax.f32 %v1137_v27, 0.0  ;;  %v1146_v24 = vmax.f32 %v1138_v59, 0.0 }
 0x2d0   : > { %v1125_v43 = vpop.xlane.xlu1 %1124  ;;  %v1128_v22 = vpop.xlane.xlu0 %1127 }
 0x2d1   : > { %1163 = vperm.xlu1 %1384, %v1145_v44   ;;  %1386 = vset.pattern.permute.xlu0 %v2409_v53  ;;  %v1139_v32 = vadd.f32 %v1125_v43, %v1701_v12  ;;  %v1140_v51 = vadd.f32 %v1128_v22, %v1706_v13 }
 0x2d3   : > { %v1147_v1 = vmax.f32 %v1139_v32, 0.0  ;;  %v1148_v48 = vmax.f32 %v1140_v51, 0.0 }
 0x2d4   : > { %v1131_v49 = vpop.xlane.xlu1 %1130  ;;  %v1134_v34 = vpop.xlane.xlu0 %1133 }
 0x2d5   : > { %1168 = vperm.xlu1 %1384, %v1146_v24   ;;  %v1141_v2 = vadd.f32 %v1131_v49, %v1711_v14  ;;  %v1142_v42 = vadd.f32 %v1134_v34, %v1716_v15 }
 0x2d7   : > { %v1149_v26 = vmax.f32 %v1141_v2, 0.0  ;;  %v1150_v29 = vmax.f32 %v1142_v42, 0.0 }
 0x2d9   : > { %1173 = vperm.xlu1 %1384, %v1147_v1  }
 0x2dd   : > { %1178 = vperm.xlu1 %1384, %v1148_v48  }
 0x2e1   : > { %1183 = vperm.xlu1 %1384, %v1149_v26   ;;  %v1569_v26 = vmov 0.0  }
 0x2e5   : > { %1188 = vperm.xlu1 %1384, %v1150_v29   ;;  %v1343_v29 = vsel %vm913_vm14, 1.0, %v1569_v26 }
 0x2e9   : > { %1387 = vset.pattern.permute.xlu1 %v2409_v53 }
 0x34c   : > { %v1154_v55 = vpop.permute.xlu1 %1153  ;;  %v1159_v21 = vpop.permute.xlu0 %1158 }
 0x34d   : > { %v1192_v6 = vmul.f32 %v1159_v21, %v1686_v9  ;;  %v1191_v35 = vmul.f32 %v1154_v55, %v1681_v8 }
 0x34f   : > { %v1201_v46 = vsel %vm1199_vm12, %v1192_v6, 0.0  ;;  %v1200_v20 = vsel %vm1199_vm12, %v1191_v35, 0.0  ;;  %v957_v6 = vsub.f32 1.0, %v1343_v29 }
 0x350   : > { %v1164_v38 = vpop.permute.xlu1 %1163  ;;  %v1202_v30 = vadd.f32 %v1201_v46, %v1200_v20 }
 0x351   : > { %v1193_v60 = vmul.f32 %v1164_v38, %v1691_v10 }
 0x353   : > { %v1203_v33 = vsel %vm1199_vm12, %v1193_v60, 0.0 }
 0x354   : > { %v1169_v4 = vpop.permute.xlu1 %1168  ;;  %v1204_v52 = vadd.f32 %v1203_v33, %v1202_v30 }
 0x355   : > { %v1194_v61 = vmul.f32 %v1169_v4, %v1696_v11 }
 0x357   : > { %v1205_v19 = vsel %vm1199_vm12, %v1194_v61, 0.0 }
 0x358   : > { %v1174_v23 = vpop.permute.xlu1 %1173  ;;  %v1206_v57 = vadd.f32 %v1205_v19, %v1204_v52 }
 0x359   : > { %v1195_v47 = vmul.f32 %v1174_v23, %v1701_v12 }
 0x35b   : > { %v1207_v0 = vsel %vm1199_vm12, %v1195_v47, 0.0 }
 0x35c   : > { %v1179_v41 = vpop.permute.xlu1 %1178  ;;  %v1208_v50 = vadd.f32 %v1207_v0, %v1206_v57 }
 0x35d   : > { %v1196_v62 = vmul.f32 %v1179_v41, %v1706_v13 }
 0x35f   : > { %v1209_v3 = vsel %vm1199_vm12, %v1196_v62, 0.0 }
 0x360   : > { %v1184_v25 = vpop.permute.xlu1 %1183  ;;  %v1210_v59 = vadd.f32 %v1209_v3, %v1208_v50 }
 0x361   : > { %v1197_v31 = vmul.f32 %v1184_v25, %v1711_v14 }
 0x363   : > { %v1211_v27 = vsel %vm1199_vm12, %v1197_v31, 0.0 }
 0x364   : > { %v1189_v44 = vpop.permute.xlu1 %1188  ;;  %v1212_v53 = vadd.f32 %v1211_v27, %v1210_v59 }
 0x365   : > { %v1198_v43 = vmul.f32 %v1189_v44, %v1716_v15 }
 0x367   : > { %v1213_v24 = vsel %vm1199_vm12, %v1198_v43, 0.0 }
 0x368   : > { %v1214_v32 = vadd.f32 %v1213_v24, %v1212_v53 }
 0x36a   : > { %v1215_v22 = vrot.slane %v1214_v32, 4 }
 0x36c   : > { %v1216_v51 = vadd.f32 %v1215_v22, %v1214_v32 }
 0x36e   : > { %v1217_v1 = vrot.slane %v1216_v51, 2 }
 0x370   : > { %v1218_v49 = vadd.f32 %v1217_v1, %v1216_v51 }
 0x372   : > { %v1219_v48 = vrot.slane %v1218_v49, 1 }
 0x374   : > { %v1220_v2 = vadd.f32 %v1219_v48, %v1218_v49 }
 0x376   : > { %v1221_v34 = vadd.f32 %v1220_v2, %v1721_v16 }
 0x378   : > { %v1223_v42 = vsel %vm1222_vm13, %v1221_v34, -inf }
 0x379   : > { %1224 = vmax.xlane.f32.xlu1 %v1223_v42 }
 0x38a   : > { %946 = vperm.xlu1 %1387, %v1343_v29  }
 0x406   : > { %v1225_v55 = vpop.xlane.xlu1 %1224 }
 0x407   : > { %v1226_v38 = vsub.f32 %v1221_v34, %v1225_v55 }
 0x409   : > { %v1227_v21 = vmul.f32 1.442695, %v1226_v38 }
 0x40a   : > { %v947_v30 = vpop.permute.xlu1 %946 }
 0x40b   : > { %1495 = vpow2.f32 %v1227_v21  ;;  %v950_v52 = vmul.f32 %v947_v30, %v2186_v58  ;;  %v949_v25 = vmul.f32 %v947_v30, %v2196_v36  ;;  %v952_v3 = vmul.f32 %v947_v30, %v2200_v56 }
 0x40c   : > { %v951_v31 = vmul.f32 %v947_v30, %v2191_v45  ;;  %v953_v59 = vmul.f32 %v947_v30, %v2208_v54  ;;  %v954_v22 = vmul.f32 %v947_v30, %v2214_v40  ;;  %v955_v36 = vmul.f32 %v947_v30, %v2224_v5 }
 0x40d   : > { %v956_v34 = vmul.f32 %v947_v30, %v2218_v37 }
 0x415   : > { %v2297_v4 = vpop.eup %1495 }
 0x416   : > { %1230 = vrot.lane.b32.xlu0 %v2297_v4, %s1570_s18 }
 0x41a   : > { %960 = vperm.xlu0 %1386, %v957_v6  }
 0x41e   : > { %1388 = vset.pattern.permute.xlu0 %v2407_v28 }
 0x488   : > { %v1231_v35 = vpop.permute.xlu0 %1230 }
 0x489   : > { %v1234_v47 = vsel %vm1233_vm15, %v1231_v35, 0.0  ;;  %v1499_v35 = vld [vmem:[%s1774_s22] sm:$0xff] }
 0x499   : > { %v961_v60 = vpop.permute.xlu0 %960 }
 0x49a   : > { %v963_v39 = vmul.f32 %v1556_v17, %v961_v60  ;;  %v1005_v60 = vsub.f32 1.0, %v1499_v35 }
 0x49c   : > { %v966_v23 = vrot.slane %v963_v39, 2  ;;  %v965_v46 = vrot.slane %v963_v39, 1  ;;  %v970_v20 = vrot.slane %v963_v39, 6  ;;  %v967_v61 = vrot.slane %v963_v39, 3 }
 0x49d   : > { %v968_v33 = vrot.slane %v963_v39, 4  ;;  %v969_v28 = vrot.slane %v963_v39, 5  ;;  %v971_v17 = vrot.slane %v963_v39, 7 }
 0x49e   : > { %976 = vrot.lane.b32.xlu1 %v966_v23, %s1568_s23  ;;  %974 = vrot.lane.b32.xlu0 %v965_v46, %s1568_s23 }
 0x4a2   : > { %972 = vrot.lane.b32.xlu1 %v963_v39, %s1568_s23  ;;  %984 = vrot.lane.b32.xlu0 %v970_v20, %s1568_s23  ;;  %v2410_v39 = vstv %s1767_s4 }
 0x4a3   : > { %v1004_v23 = vmul.f32 %v1499_v35, %v2410_v39 }
 0x4a6   : > { %978 = vrot.lane.b32.xlu1 %v967_v61, %s1568_s23 }
 0x4aa   : > { %980 = vrot.lane.b32.xlu1 %v968_v33, %s1568_s23 }
 0x4ae   : > { %982 = vrot.lane.b32.xlu1 %v969_v28, %s1568_s23 }
 0x4b2   : > { %986 = vrot.lane.b32.xlu1 %v971_v17, %s1568_s23  ;;  %s1246_s23 = scalar_lea.vmem %s2371_s9, %s1560_s20  ;;  %s79_s20 = sadd.s32 1, %s1560_s20  }
 0x4b3   : > { %p76_p5 = scmp.ge.s32.totalorder %s79_s20, 16  }
 0x4b4   :  { %s1573_s24 = smov (%p76_p5), [#allocation5]  }
 0x4b5   :  { %s1289_s0 = sshll.u32 (%p76_p5), %s1573_s24, 4  ;;  %s1290_s0 = int_to_ptr.vmem [resolvable:$true] %s1289_s0 }
 0x4b6   :  { %s1512_s3 = scalar_lea.vmem (%p76_p5), %s1290_s0, 128  ;;  %p1517_p7 = scmp.lt.s32.totalorder (%p76_p5), %s1290_s0, %s1290_s0 }
 0x4b7   :  { %p1513_p6 = scmp.ne.s32.totalorder (%p76_p5), %s1290_s0, %s1512_s3  ;;  %p1518_p8 = scmp.lt.s32.totalorder (%p76_p5), %s1512_s3, %s1512_s3 }
 0x4b9   :  { %p1519_p9 = por (%p76_p5), %p1518_p8, %p1517_p7 }
 0x4bb   :  { %p1520_p10 = pnand (%p76_p5), %p1519_p9, %p1513_p6 }
 0x4c1   : > { %1235 = vadd.xlane.f32.xlu0 %v1234_v47 }
 0x4d7   : > { %1007 = vrot.lane.b32.xlu0 %v1552_v18, %s1571_s19 }
 0x510   : > { %v977_v41 = vpop.permute.xlu1 %976  ;;  %v975_v62 = vpop.permute.xlu0 %974 }
 0x511   : > { %v997_v57 = vadd.f32 %v975_v62, %v950_v52  ;;  %v998_v44 = vadd.f32 %v977_v41, %v951_v31 }
 0x513   : > { %v1256_v43 = vrot.slane %v997_v57, 7  ;;  %v1258_v51 = vrot.slane %v998_v44, 6 }
 0x514   : > { %v973_v19 = vpop.permute.xlu1 %972  ;;  %v985_v24 = vpop.permute.xlu0 %984 }
 0x515   : > { %v996_v50 = vadd.f32 %v973_v19, %v949_v25  ;;  %v1002_v49 = vadd.f32 %v985_v24, %v955_v36 }
 0x517   : > { %v1257_v32 = vsel %vm707_vm1, %v1256_v43, %v996_v50  ;;  %v1266_v5 = vrot.slane %v1002_v49, 2  ;;  %vm1279_vm1 = vcmask (%p76_p5), 7168  }
 0x518   : > { %v979_v0 = vpop.permute.xlu1 %978  ;;  %v1259_v54 = vsel %vm710_vm2, %v1258_v51, %v1257_v32 }
 0x519   : > { %v999_v27 = vadd.f32 %v979_v0, %v952_v3 }
 0x51b   : > { %v1260_v58 = vrot.slane %v999_v27, 5 }
 0x51c   : > { %v981_v18 = vpop.permute.xlu1 %980 }
 0x51d   : > { %v1000_v53 = vadd.f32 %v981_v18, %v953_v59  ;;  %v1261_v48 = vsel %vm713_vm3, %v1260_v58, %v1259_v54 }
 0x51f   : > { %v1262_v56 = vrot.slane %v1000_v53, 4 }
 0x520   : > { %v983_v1 = vpop.permute.xlu1 %982 }
 0x521   : > { %v1001_v45 = vadd.f32 %v983_v1, %v954_v22  ;;  %v1263_v42 = vsel %vm716_vm4, %v1262_v56, %v1261_v48 }
 0x523   : > { %v1264_v2 = vrot.slane %v1001_v45, 3 }
 0x524   : > { %v987_v26 = vpop.permute.xlu1 %986 }
 0x525   : > { %v1265_v40 = vsel %vm719_vm5, %v1264_v2, %v1263_v42  ;;  %v1003_v29 = vadd.f32 %v987_v26, %v956_v34 }
 0x526   : > { %v1267_v38 = vsel %vm722_vm6, %v1266_v5, %v1265_v40 }
 0x527   : > { %v1268_v55 = vrot.slane %v1003_v29, 1 }
 0x529   : > { %v1269_v21 = vsel %vm725_vm7, %v1268_v55, %v1267_v38 }
 0x52a   : > { %1270 = vrot.lane.b32.xlu0 %v1269_v21, %s1567_s21 }
 0x54e   : > { %v1236_v6 = vpop.xlane.xlu0 %1235 }
 0x54f   : > { %1497 = vrcp.f32 %v1236_v6 }
 0x552   : > { %v1008_v37 = vpop.permute.xlu0 %1007 }
 0x553   : > { %v1010_v46 = vmul.f32 %v1008_v37, %v1005_v60 }
 0x555   : > { %v1011_v33 = vadd.f32 %v1010_v46, %v1004_v23 }
 0x559   : > { %v1498_v20 = vpop.eup %1497 }
 0x55a   : > { %v1238_v61 = vmul.f32 %v1498_v20, %v2297_v4 }
 0x55c   : > { %1240 = vrot.lane.b32.xlu1 %v1238_v61, %s1572_s5 }
 0x560   : > { %1274 = vrot.lane.b32.xlu1 %v1011_v33, %s1570_s18 }
 0x59c   : > { %v1271_v28 = vpop.permute.xlu0 %1270  }
 0x59d   :  { %1278 = vst.msk [vmem:[#allocation5] sm:$0xff] (%p76_p5), %vm1043_vm9, %v1271_v28 }
 0x5cd   :  { %78 = sbr.rel (!%p76_p5) target bundleno = 24 (0x18), region = 90 }
 0x5ce   : > { %v1241_v17 = vpop.permute.xlu1 %1240 }
 0x5cf   : > { %v1243_v47 = vsel %vm1043_vm9, %v2231_v63, %v1241_v17  ;;  %v2412_v17 = vmov %v1271_v28 }
 0x5d0   : > { %v1245_v30 = vsel %vm1244_vm0, %v1243_v47, 0.0 }
 0x5d1   : > { %1247 = vst [vmem:[%s1246_s23] sm:$0x1] %v1245_v30 }
 0x5d2   : > { %v1275_v41 = vpop.permute.xlu1 %1274  }
 0x5d3   : > { %v2411_v18 = vmov %v1275_v41  ;;  %1280 = vst.msk [vmem:[%s2373_s11] sm:$0xff] (%p76_p5), %vm1279_vm1, %v1275_v41 }
 0x5d4   :  { %1523 = shalt.err (!%p1520_p10)
}
 0x5d5   :  { %s1524_s1 = scalar_lea.hbm %s2372_s10, 128 }
 0x5d6   :  { %p1525_p11 = scmp.ne.s32.totalorder %s2372_s10, %s1524_s1  ;;  %p1528_p12 = scmp.lt.u32.totalorder %s1524_s1, %s2372_s10 }
 0x5d8   :  { %p1530_p13 = pnand %p1528_p12, %p1525_p11 }
 0x5da   :  { %1533 = shalt.err (!%p1530_p13)
}
 0x5db   :  { %1292 = dma.vmem_to_hbm [thread:$0]  %s1290_s0, 128, %s2372_s10, [#allocation3]  }
 0x5dc   :  { %1548 = dma.done.wait [#allocation3], 128  }
 0x5dd   :  { %1549 = vsyncadd [#allocation3], 4294967168 }
 0x5de   :  { %1302 = vsyncpa [#allocation3], 1 }
 0x5df   :  { %1303 = vsyncpa [#allocation4], 1 }

</bundles_post_ra>
